<compile_context>
chip_gen: v5e
topology: v5e:2x2
jax: 0.10.0
libtpu: 0.0.40
codegen_flags: <defaults>
</compile_context>

<pallas_src>
import functools

import jax
import jax.numpy as jnp
import numpy as np
from jax import lax
from jax.experimental import pallas as pl
from jax.experimental.pallas import tpu as pltpu


# ----------------------------------------------------------------------------
# Pallas kernel 1: hoisted input projection  G = X @ W_fused + b_fused
# ----------------------------------------------------------------------------
def _input_proj_kernel(x_ref, w_ref, b_ref, o_ref):
    o_ref[...] = (jnp.dot(x_ref[...], w_ref[...],
                          preferred_element_type=jnp.float32)
                  + b_ref[...])


def input_projection(x2d, w_fused_t, b_fused):
    """x2d: [T*Bp, F] -> [T*Bp, 8H].  One MXU-shaped, 128-lane matmul replaces
    T per-step micro-matmuls; the bias add is amortized over all timesteps."""
    TB, F = x2d.shape
    G8 = w_fused_t.shape[1]
    return pl.pallas_call(
        _input_proj_kernel,
        out_shape=jax.ShapeDtypeStruct((TB, G8), jnp.float32),
        grid=(1,),
        in_specs=[
            pl.BlockSpec((TB, F), lambda i: (0, 0)),
            pl.BlockSpec((F, G8), lambda i: (0, 0)),
            pl.BlockSpec((1, G8), lambda i: (0, 0)),
        ],
        out_specs=pl.BlockSpec((TB, G8), lambda i: (0, 0)),
        compiler_params=pltpu.CompilerParams(
            dimension_semantics=("arbitrary",)),
    )(x2d, w_fused_t, b_fused)


# ----------------------------------------------------------------------------
# Pallas kernel 2: fused forward+backward LSTM recurrence for one layer.
# Single grid step; time loop unrolled in-kernel; state lives in vregs.
# ----------------------------------------------------------------------------
def _bilstm_recurrence_kernel(len_ref, gx_ref, whh_ref,
                              outf_ref, outb_ref, hT_ref, cT_ref,
                              *, H, T, Bp):
    G = 2 * H                                   # fused (fwd|bwd) state width
    lens = len_ref[...]                         # [Bp, 1] int32
    # lane map of the fused state: lanes [0,H) = fwd, lanes [H,2H) = bwd
    is_bwd_lane = lax.broadcasted_iota(jnp.int32, (1, G), 1) >= H
    whh = whh_ref[...]                          # [2H, 8H], loaded once

    h = jnp.zeros((Bp, G), jnp.float32)
    c = jnp.zeros((Bp, G), jnp.float32)

    # Fully-unrolled time loop (T static & small).  For long sequences switch
    # to lax.fori_loop(..., unroll=k) over time chunks (VMEM budget, esp. v7x).
    for s in range(T):
        tb = T - 1 - s                          # backward-direction time index

        # gates = precomputed x-part (bias already folded) + recurrent part.
        gates = gx_ref[s] + jnp.dot(h, whh, preferred_element_type=jnp.float32)

        # interleaved gate layout -> each slice is a 32-lane aligned chunk
        ig = jax.nn.sigmoid(gates[:, 0 * G:1 * G])
        fg = jax.nn.sigmoid(gates[:, 1 * G:2 * G])
        gg = jnp.tanh(gates[:, 2 * G:3 * G])
        og = jax.nn.sigmoid(gates[:, 3 * G:4 * G])

        c_new = fg * c + ig * gg
        h_new = og * jnp.tanh(c_new)

        # pack/unpack semantics: freeze state & zero output on padded steps.
        m_f = (s < lens).astype(jnp.float32)    # [Bp, 1]
        m_b = (tb < lens).astype(jnp.float32)   # [Bp, 1]
        m = jnp.where(is_bwd_lane, m_b, m_f)    # [Bp, 2H]

        h = m * h_new + (1.0 - m) * h
        c = m * c_new + (1.0 - m) * c

        out_h = m * h_new                       # padded positions emit 0
        outf_ref[s] = out_h[:, :H]              # fwd output at time s
        outb_ref[tb] = out_h[:, H:]             # bwd output at time T-1-s

    hT_ref[...] = h                             # [h_fwd_final | h_bwd_final]
    cT_ref[...] = c


def bilstm_layer(x, lengths_col, p, *, H, T, Bp):
    """One fused bidirectional LSTM layer.

    x:           [T, Bp, F] float32
    lengths_col: [Bp, 1]    int32
    p: {w_ih_fused_t [F, 8H], w_hh_fused [2H, 8H], b_fused [1, 8H]}
    Returns (out [T, Bp, 2H], hT [Bp, 2H], cT [Bp, 2H]), all [fwd | bwd].
    """
    F = x.shape[-1]
    G8 = 8 * H

    # Hoisted, batched input projection over all timesteps.
    gx = input_projection(x.reshape(T * Bp, F), p["w_ih_fused_t"], p["b_fused"])
    # Step-align the gate slab: at kernel step s the fwd sub-columns must come
    # from time s and the bwd sub-columns from time T-1-s (XLA glue reshuffle).
    gx = gx.reshape(T, Bp, 4, 2, H)
    gx_step = jnp.stack([gx[:, :, :, 0, :], gx[::-1, :, :, 1, :]], axis=3)
    gx_step = gx_step.reshape(T, Bp, G8)

    kernel = functools.partial(_bilstm_recurrence_kernel, H=H, T=T, Bp=Bp)
    out_f, out_b, hT, cT = pl.pallas_call(
        kernel,
        out_shape=(jax.ShapeDtypeStruct((T, Bp, H), jnp.float32),
                   jax.ShapeDtypeStruct((T, Bp, H), jnp.float32),
                   jax.ShapeDtypeStruct((Bp, 2 * H), jnp.float32),
                   jax.ShapeDtypeStruct((Bp, 2 * H), jnp.float32)),
        grid=(1,),
        in_specs=[
            pl.BlockSpec((Bp, 1), lambda i: (0, 0)),
            pl.BlockSpec((T, Bp, G8), lambda i: (0, 0, 0)),
            pl.BlockSpec((2 * H, G8), lambda i: (0, 0)),
        ],
        out_specs=(
            pl.BlockSpec((T, Bp, H), lambda i: (0, 0, 0)),
            pl.BlockSpec((T, Bp, H), lambda i: (0, 0, 0)),
            pl.BlockSpec((Bp, 2 * H), lambda i: (0, 0)),
            pl.BlockSpec((Bp, 2 * H), lambda i: (0, 0)),
        ),
        compiler_params=pltpu.CompilerParams(
            dimension_semantics=("arbitrary",)),
    )(lengths_col, gx_step, p["w_hh_fused"])

    out = jnp.concatenate([out_f, out_b], axis=-1)   # [T, Bp, 2H]
    return out, hT, cT


# ----------------------------------------------------------------------------
# Parameter fusion (one-time prep) and encoder forward.
# ----------------------------------------------------------------------------
def fuse_direction_params(w_ih_f, w_hh_f, b_ih_f, b_hh_f,
                          w_ih_b, w_hh_b, b_ih_b, b_hh_b):
    """Fuse PyTorch-layout fwd/bwd LSTM weights (w_ih [4H,F], w_hh [4H,H],
    biases [4H]) into the interleaved-gate layout used by the kernels:
    columns ordered [(i_f,i_b),(f_f,f_b),(g_f,g_b),(o_f,o_b)]  (8H = 128)."""
    fourH, F = w_ih_f.shape
    H = fourH // 4
    w_ih = jnp.stack([w_ih_f.T.reshape(F, 4, H),
                      w_ih_b.T.reshape(F, 4, H)], axis=2).reshape(F, 8 * H)
    w_hh = jnp.zeros((2 * H, 4, 2, H), jnp.float32)
    w_hh = w_hh.at[:H, :, 0, :].set(w_hh_f.T.reshape(H, 4, H))
    w_hh = w_hh.at[H:, :, 1, :].set(w_hh_b.T.reshape(H, 4, H))
    w_hh = w_hh.reshape(2 * H, 8 * H)
    b = jnp.stack([(b_ih_f + b_hh_f).reshape(4, H),
                   (b_ih_b + b_hh_b).reshape(4, H)], axis=1).reshape(1, 8 * H)
    return {"w_ih_fused_t": w_ih, "w_hh_fused": w_hh, "b_fused": b}


def rnn_encoder_forward(src, lengths, embed_table, fused_params, *,
                        num_layers, hidden_per_dir):
    """Replicates RNNEncoder.forward (rnn_type='LSTM', bidirectional=True).

    src:     [T, B] int32 token ids
    lengths: [B]    int32 valid lengths
    Returns (output [T, B, 2H], (h_n [L, B, 2H], c_n [L, B, 2H])).
    """
    T, B = src.shape
    H = hidden_per_dir
    Bp = ((B + 7) // 8) * 8           # pad batch to full 8-sublane groups

    x = embed_table[src].astype(jnp.float32)       # [T, B, E]  (XLA gather glue)
    if Bp != B:
        x = jnp.pad(x, ((0, 0), (0, Bp - B), (0, 0)))
        lengths_p = jnp.pad(lengths.astype(jnp.int32), (0, Bp - B))
    else:
        lengths_p = lengths.astype(jnp.int32)
    lengths_col = lengths_p[:, None]               # [Bp, 1]

    layer_in = x
    h_finals, c_finals = [], []
    for layer in range(num_layers):
        out, hT, cT = bilstm_layer(layer_in, lengths_col, fused_params[layer],
                                   H=H, T=T, Bp=Bp)
        h_finals.append(hT)
        c_finals.append(cT)
        # TODO(synk): inter-layer dropout not applied (module default dropout=0.0)
        layer_in = out

    output = layer_in[:, :B]                       # [T, B, 2H]
    # fix_final_state_size: per-layer cat([h_fwd, h_bwd], -1) is exactly the
    # kernel's fused state layout; stack layers and drop batch padding.
    h_n = jnp.stack(h_finals, 0)[:, :B]
    c_n = jnp.stack(c_finals, 0)[:, :B]
    return output, (h_n, c_n)


# ----------------------------------------------------------------------------
# Pure-JAX reference (per-direction loop) for a correctness sanity check.
# ----------------------------------------------------------------------------
def _lstm_dir_ref(x, mask, w_ih_t, w_hh_t, b, reverse):
    T, B, _ = x.shape
    H = w_hh_t.shape[0]
    h = jnp.zeros((B, H), jnp.float32)
    c = jnp.zeros((B, H), jnp.float32)
    outs = [None] * T
    trange = range(T - 1, -1, -1) if reverse else range(T)
    for t in trange:
        g = x[t] @ w_ih_t + h @ w_hh_t + b
        ig = jax.nn.sigmoid(g[:, 0 * H:1 * H])
        fg = jax.nn.sigmoid(g[:, 1 * H:2 * H])
        gg = jnp.tanh(g[:, 2 * H:3 * H])
        og = jax.nn.sigmoid(g[:, 3 * H:4 * H])
        c_new = fg * c + ig * gg
        h_new = og * jnp.tanh(c_new)
        m = mask[t]
        h = m * h_new + (1.0 - m) * h
        c = m * c_new + (1.0 - m) * c
        outs[t] = m * h_new
    return jnp.stack(outs, 0), h, c


# ----------------------------------------------------------------------------
# Main
# ----------------------------------------------------------------------------
if __name__ == "__main__":
    key = jax.random.PRNGKey(0)

    # Module config (rnn_type='LSTM', bidirectional=True, num_layers=2).
    VOCAB = 20
    EMBED_DIM = 16
    HIDDEN_SIZE = 32            # total hidden (split across 2 directions)
    NUM_LAYERS = 2
    H = HIDDEN_SIZE // 2        # per-direction hidden (8H = 128 fused lanes)
    T, B = 8, 4                 # L_s x B

    keys = iter(jax.random.split(key, 40))

    embed_table = 0.1 * jax.random.normal(next(keys), (VOCAB, EMBED_DIM),
                                          jnp.float32)

    # LSTM parameters in PyTorch layout; keep raw per-direction copies for the
    # reference, and build fused/interleaved copies for the Pallas kernels.
    raw_params = {}
    fused_params = []
    for layer in range(NUM_LAYERS):
        in_size = EMBED_DIM if layer == 0 else 2 * H
        per_dir = []
        for direction in range(2):      # 0 = fwd, 1 = bwd
            w_ih = 0.1 * jax.random.normal(next(keys), (4 * H, in_size),
                                           jnp.float32)
            w_hh = 0.1 * jax.random.normal(next(keys), (4 * H, H), jnp.float32)
            b_ih = 0.1 * jax.random.normal(next(keys), (4 * H,), jnp.float32)
            b_hh = 0.1 * jax.random.normal(next(keys), (4 * H,), jnp.float32)
            raw_params[(layer, direction)] = {
                "w_ih_t": w_ih.T,                   # [in, 4H]
                "w_hh_t": w_hh.T,                   # [H, 4H]
                "b": (b_ih + b_hh)[None, :],        # [1, 4H]
            }
            per_dir.append((w_ih, w_hh, b_ih, b_hh))
        (wif, whf, bif, bhf), (wib, whb, bib, bhb) = per_dir
        fused_params.append(
            fuse_direction_params(wif, whf, bif, bhf, wib, whb, bib, bhb))

    # Inputs: padded token sequences [T, B] and lengths [B].
    src = jax.random.randint(next(keys), (T, B), 0, VOCAB, dtype=jnp.int32)
    lengths = jnp.array([8, 7, 5, 3], dtype=jnp.int32)

    fwd = jax.jit(functools.partial(rnn_encoder_forward,
                                    num_layers=NUM_LAYERS, hidden_per_dir=H))
    output, (h_n, c_n) = fwd(src, lengths, embed_table, fused_params)
    output = jax.block_until_ready(output)
    h_n = jax.block_until_ready(h_n)
    c_n = jax.block_until_ready(c_n)

    assert output.shape == (T, B, 2 * H)
    assert h_n.shape == (NUM_LAYERS, B, 2 * H)
    assert c_n.shape == (NUM_LAYERS, B, 2 * H)

    # Reference check against a pure-JAX LSTM with identical masking semantics.
    x_ref_in = embed_table[src].astype(jnp.float32)
    t_idx = jnp.arange(T, dtype=jnp.int32)[:, None]
    mask = (t_idx < lengths[None, :]).astype(jnp.float32)[:, :, None]
    h_fin_ref, c_fin_ref = [], []
    layer_in = x_ref_in
    for layer in range(NUM_LAYERS):
        douts = []
        for direction in range(2):
            p = raw_params[(layer, direction)]
            o, hT, cT = _lstm_dir_ref(layer_in, mask, p["w_ih_t"], p["w_hh_t"],
                                      p["b"], reverse=(direction == 1))
            douts.append(o)
            h_fin_ref.append(hT)
            c_fin_ref.append(cT)
        layer_in = jnp.concatenate(douts, axis=-1)
    out_ref = layer_in
    hn_ref = jnp.stack(h_fin_ref, 0)
    cn_ref = jnp.stack(c_fin_ref, 0)
    hn_ref = jnp.concatenate([hn_ref[0::2], hn_ref[1::2]], axis=-1)
    cn_ref = jnp.concatenate([cn_ref[0::2], cn_ref[1::2]], axis=-1)

    np.testing.assert_allclose(np.asarray(output), np.asarray(out_ref),
                               rtol=1e-4, atol=1e-4)
    np.testing.assert_allclose(np.asarray(h_n), np.asarray(hn_ref),
                               rtol=1e-4, atol=1e-4)
    np.testing.assert_allclose(np.asarray(c_n), np.asarray(cn_ref),
                               rtol=1e-4, atol=1e-4)

    print("KERNEL_OK")
</pallas_src>

<mosaic_0001>
module attributes {stable_mosaic.version = 11 : i64} {
  func.func @_input_proj_kernel(%arg0: i32, %arg1: memref<64x16xf32, #tpu.memory_space<vmem>>, %arg2: memref<16x128xf32, #tpu.memory_space<vmem>>, %arg3: memref<1x128xf32, #tpu.memory_space<vmem>>, %arg4: memref<64x128xf32, #tpu.memory_space<vmem>>) attributes {dimension_semantics = [#tpu.dimension_semantics<arbitrary>], iteration_bounds = array<i64: 1>, scalar_prefetch = 0 : i64, scratch_operands = 0 : i64, tpu.core_type = #tpu.core_type<tc>, window_params = [{pipeline_mode = #tpu.pipeline_mode<synchronous>, transform_indices = @transform_0, window_bounds = array<i64: 64, 16>}, {pipeline_mode = #tpu.pipeline_mode<synchronous>, transform_indices = @transform_1, window_bounds = array<i64: 16, 128>}, {pipeline_mode = #tpu.pipeline_mode<synchronous>, transform_indices = @transform_2, window_bounds = array<i64: 1, 128>}, {pipeline_mode = #tpu.pipeline_mode<synchronous>, transform_indices = @transform_3, window_bounds = array<i64: 64, 128>}]} {
    %c0 = arith.constant 0 : index
    %c0_0 = arith.constant 0 : index
    %0 = vector.load %arg1[%c0, %c0_0] : memref<64x16xf32, #tpu.memory_space<vmem>>, vector<64x16xf32>
    %c0_1 = arith.constant 0 : index
    %c0_2 = arith.constant 0 : index
    %1 = vector.load %arg2[%c0_1, %c0_2] : memref<16x128xf32, #tpu.memory_space<vmem>>, vector<16x128xf32>
    %cst = arith.constant dense<0.000000e+00> : vector<64x128xf32>
    %2 = tpu.matmul %0, %1, %cst {dimension_numbers = #tpu.dot_dimension_numbers<[1], [0], [0], [1], [0, 0, 1, 1], [], []>} : vector<64x16xf32>, vector<16x128xf32>, vector<64x128xf32> -> vector<64x128xf32>
    %c0_3 = arith.constant 0 : index
    %c0_4 = arith.constant 0 : index
    %3 = vector.load %arg3[%c0_3, %c0_4] : memref<1x128xf32, #tpu.memory_space<vmem>>, vector<1x128xf32>
    %4 = vector.broadcast %3 : vector<1x128xf32> to vector<64x128xf32>
    %5 = arith.addf %2, %4 : vector<64x128xf32>
    %c0_5 = arith.constant 0 : index
    %c0_6 = arith.constant 0 : index
    %6 = vector.load %arg4[%c0_5, %c0_6] : memref<64x128xf32, #tpu.memory_space<vmem>>, vector<64x128xf32>
    tpu.vector_store %arg4[%c0_5, %c0_6], %5 {strides = array<i32>} : memref<64x128xf32, #tpu.memory_space<vmem>>, vector<64x128xf32>,
    return
  }
  func.func @transform_0(%arg0: i32) -> (i32, i32) {
    %c0_i32 = arith.constant 0 : i32
    %c0_i32_0 = arith.constant 0 : i32
    %c0_i32_1 = arith.constant 0 : i32
    return %c0_i32, %c0_i32_0 : i32, i32
  }
  func.func @transform_1(%arg0: i32) -> (i32, i32) {
    %c0_i32 = arith.constant 0 : i32
    %c0_i32_0 = arith.constant 0 : i32
    %c0_i32_1 = arith.constant 0 : i32
    return %c0_i32, %c0_i32_0 : i32, i32
  }
  func.func @transform_2(%arg0: i32) -> (i32, i32) {
    %c0_i32 = arith.constant 0 : i32
    %c0_i32_0 = arith.constant 0 : i32
    %c0_i32_1 = arith.constant 0 : i32
    return %c0_i32, %c0_i32_0 : i32, i32
  }
  func.func @transform_3(%arg0: i32) -> (i32, i32) {
    %c0_i32 = arith.constant 0 : i32
    %c0_i32_0 = arith.constant 0 : i32
    %c0_i32_1 = arith.constant 0 : i32
    return %c0_i32, %c0_i32_0 : i32, i32
  }
}

module attributes {stable_mosaic.version = 11 : i64} {
  func.func @_input_proj_kernel(%arg0: i32, %arg1: memref<64x32xf32, #tpu.memory_space<vmem>>, %arg2: memref<32x128xf32, #tpu.memory_space<vmem>>, %arg3: memref<1x128xf32, #tpu.memory_space<vmem>>, %arg4: memref<64x128xf32, #tpu.memory_space<vmem>>) attributes {dimension_semantics = [#tpu.dimension_semantics<arbitrary>], iteration_bounds = array<i64: 1>, scalar_prefetch = 0 : i64, scratch_operands = 0 : i64, tpu.core_type = #tpu.core_type<tc>, window_params = [{pipeline_mode = #tpu.pipeline_mode<synchronous>, transform_indices = @transform_0, window_bounds = array<i64: 64, 32>}, {pipeline_mode = #tpu.pipeline_mode<synchronous>, transform_indices = @transform_1, window_bounds = array<i64: 32, 128>}, {pipeline_mode = #tpu.pipeline_mode<synchronous>, transform_indices = @transform_2, window_bounds = array<i64: 1, 128>}, {pipeline_mode = #tpu.pipeline_mode<synchronous>, transform_indices = @transform_3, window_bounds = array<i64: 64, 128>}]} {
    %c0 = arith.constant 0 : index
    %c0_0 = arith.constant 0 : index
    %0 = vector.load %arg1[%c0, %c0_0] : memref<64x32xf32, #tpu.memory_space<vmem>>, vector<64x32xf32>
    %c0_1 = arith.constant 0 : index
    %c0_2 = arith.constant 0 : index
    %1 = vector.load %arg2[%c0_1, %c0_2] : memref<32x128xf32, #tpu.memory_space<vmem>>, vector<32x128xf32>
    %cst = arith.constant dense<0.000000e+00> : vector<64x128xf32>
    %2 = tpu.matmul %0, %1, %cst {dimension_numbers = #tpu.dot_dimension_numbers<[1], [0], [0], [1], [0, 0, 1, 1], [], []>} : vector<64x32xf32>, vector<32x128xf32>, vector<64x128xf32> -> vector<64x128xf32>
    %c0_3 = arith.constant 0 : index
    %c0_4 = arith.constant 0 : index
    %3 = vector.load %arg3[%c0_3, %c0_4] : memref<1x128xf32, #tpu.memory_space<vmem>>, vector<1x128xf32>
    %4 = vector.broadcast %3 : vector<1x128xf32> to vector<64x128xf32>
    %5 = arith.addf %2, %4 : vector<64x128xf32>
    %c0_5 = arith.constant 0 : index
    %c0_6 = arith.constant 0 : index
    %6 = vector.load %arg4[%c0_5, %c0_6] : memref<64x128xf32, #tpu.memory_space<vmem>>, vector<64x128xf32>
    tpu.vector_store %arg4[%c0_5, %c0_6], %5 {strides = array<i32>} : memref<64x128xf32, #tpu.memory_space<vmem>>, vector<64x128xf32>,
    return
  }
  func.func @transform_0(%arg0: i32) -> (i32, i32) {
    %c0_i32 = arith.constant 0 : i32
    %c0_i32_0 = arith.constant 0 : i32
    %c0_i32_1 = arith.constant 0 : i32
    return %c0_i32, %c0_i32_0 : i32, i32
  }
  func.func @transform_1(%arg0: i32) -> (i32, i32) {
    %c0_i32 = arith.constant 0 : i32
    %c0_i32_0 = arith.constant 0 : i32
    %c0_i32_1 = arith.constant 0 : i32
    return %c0_i32, %c0_i32_0 : i32, i32
  }
  func.func @transform_2(%arg0: i32) -> (i32, i32) {
    %c0_i32 = arith.constant 0 : i32
    %c0_i32_0 = arith.constant 0 : i32
    %c0_i32_1 = arith.constant 0 : i32
    return %c0_i32, %c0_i32_0 : i32, i32
  }
  func.func @transform_3(%arg0: i32) -> (i32, i32) {
    %c0_i32 = arith.constant 0 : i32
    %c0_i32_0 = arith.constant 0 : i32
    %c0_i32_1 = arith.constant 0 : i32
    return %c0_i32, %c0_i32_0 : i32, i32
  }
}

module attributes {stable_mosaic.version = 11 : i64} {
  func.func @_bilstm_recurrence_kernel(%arg0: i32, %arg1: memref<8x1xi32, #tpu.memory_space<vmem>>, %arg2: memref<8x8x128xf32, #tpu.memory_space<vmem>>, %arg3: memref<32x128xf32, #tpu.memory_space<vmem>>, %arg4: memref<8x8x16xf32, #tpu.memory_space<vmem>>, %arg5: memref<8x8x16xf32, #tpu.memory_space<vmem>>, %arg6: memref<8x32xf32, #tpu.memory_space<vmem>>, %arg7: memref<8x32xf32, #tpu.memory_space<vmem>>) attributes {dimension_semantics = [#tpu.dimension_semantics<arbitrary>], iteration_bounds = array<i64: 1>, scalar_prefetch = 0 : i64, scratch_operands = 0 : i64, tpu.core_type = #tpu.core_type<tc>, window_params = [{pipeline_mode = #tpu.pipeline_mode<synchronous>, transform_indices = @transform_0, window_bounds = array<i64: 8, 1>}, {pipeline_mode = #tpu.pipeline_mode<synchronous>, transform_indices = @transform_1, window_bounds = array<i64: 8, 8, 128>}, {pipeline_mode = #tpu.pipeline_mode<synchronous>, transform_indices = @transform_2, window_bounds = array<i64: 32, 128>}, {pipeline_mode = #tpu.pipeline_mode<synchronous>, transform_indices = @transform_3, window_bounds = array<i64: 8, 8, 16>}, {pipeline_mode = #tpu.pipeline_mode<synchronous>, transform_indices = @transform_4, window_bounds = array<i64: 8, 8, 16>}, {pipeline_mode = #tpu.pipeline_mode<synchronous>, transform_indices = @transform_5, window_bounds = array<i64: 8, 32>}, {pipeline_mode = #tpu.pipeline_mode<synchronous>, transform_indices = @transform_6, window_bounds = array<i64: 8, 32>}]} {
    %c0 = arith.constant 0 : index
    %c0_0 = arith.constant 0 : index
    %0 = vector.load %arg1[%c0, %c0_0] : memref<8x1xi32, #tpu.memory_space<vmem>>, vector<8x1xi32>
    %1 = tpu.iota {dimensions = array<i32: 1>} : vector<1x32xi32>
    %c16_i32 = arith.constant 16 : i32
    %2 = vector.broadcast %c16_i32 : i32 to vector<1x32xi32>
    %3 = arith.cmpi sge, %1, %2 : vector<1x32xi32>
    %c0_1 = arith.constant 0 : index
    %c0_2 = arith.constant 0 : index
    %4 = vector.load %arg3[%c0_1, %c0_2] : memref<32x128xf32, #tpu.memory_space<vmem>>, vector<32x128xf32>
    %cst = arith.constant 0.000000e+00 : f32
    %5 = vector.broadcast %cst : f32 to vector<8x32xf32>
    %cst_3 = arith.constant 0.000000e+00 : f32
    %6 = vector.broadcast %cst_3 : f32 to vector<8x32xf32>
    %c0_4 = arith.constant 0 : index
    %c0_5 = arith.constant 0 : index
    %c0_6 = arith.constant 0 : index
    %7 = vector.load %arg2[%c0_4, %c0_5, %c0_6] : memref<8x8x128xf32, #tpu.memory_space<vmem>>, vector<1x8x128xf32>
    %8 = vector.shape_cast %7 : vector<1x8x128xf32> to vector<8x128xf32>
    %cst_7 = arith.constant dense<0.000000e+00> : vector<8x128xf32>
    %9 = tpu.matmul %5, %4, %cst_7 {dimension_numbers = #tpu.dot_dimension_numbers<[1], [0], [0], [1], [0, 0, 1, 1], [], []>} : vector<8x32xf32>, vector<32x128xf32>, vector<8x128xf32> -> vector<8x128xf32>
    %10 = arith.addf %8, %9 : vector<8x128xf32>
    %11 = vector.extract_strided_slice %10 {offsets = [0, 0], sizes = [8, 32], strides = [1, 1]} : vector<8x128xf32> to vector<8x32xf32>
    %12 = arith.negf %11 : vector<8x32xf32>
    %13 = math.exp %12 : vector<8x32xf32>
    %cst_8 = arith.constant 1.000000e+00 : f32
    %14 = vector.broadcast %cst_8 : f32 to vector<8x32xf32>
    %15 = arith.addf %14, %13 : vector<8x32xf32>
    %16 = arith.divf %14, %15 : vector<8x32xf32>
    %17 = vector.extract_strided_slice %10 {offsets = [0, 32], sizes = [8, 32], strides = [1, 1]} : vector<8x128xf32> to vector<8x32xf32>
    %18 = arith.negf %17 : vector<8x32xf32>
    %19 = math.exp %18 : vector<8x32xf32>
    %cst_9 = arith.constant 1.000000e+00 : f32
    %20 = vector.broadcast %cst_9 : f32 to vector<8x32xf32>
    %21 = arith.addf %20, %19 : vector<8x32xf32>
    %22 = arith.divf %20, %21 : vector<8x32xf32>
    %23 = vector.extract_strided_slice %10 {offsets = [0, 64], sizes = [8, 32], strides = [1, 1]} : vector<8x128xf32> to vector<8x32xf32>
    %24 = math.tanh %23 : vector<8x32xf32>
    %25 = vector.extract_strided_slice %10 {offsets = [0, 96], sizes = [8, 32], strides = [1, 1]} : vector<8x128xf32> to vector<8x32xf32>
    %26 = arith.negf %25 : vector<8x32xf32>
    %27 = math.exp %26 : vector<8x32xf32>
    %cst_10 = arith.constant 1.000000e+00 : f32
    %28 = vector.broadcast %cst_10 : f32 to vector<8x32xf32>
    %29 = arith.addf %28, %27 : vector<8x32xf32>
    %30 = arith.divf %28, %29 : vector<8x32xf32>
    %31 = arith.mulf %22, %6 : vector<8x32xf32>
    %32 = arith.mulf %16, %24 : vector<8x32xf32>
    %33 = arith.addf %31, %32 : vector<8x32xf32>
    %34 = math.tanh %33 : vector<8x32xf32>
    %35 = arith.mulf %30, %34 : vector<8x32xf32>
    %c0_i32 = arith.constant 0 : i32
    %36 = vector.broadcast %c0_i32 : i32 to vector<8x1xi32>
    %37 = arith.cmpi sgt, %0, %36 : vector<8x1xi32>
    %38 = arith.extui %37 : vector<8x1xi1> to vector<8x1xi32>
    %39 = arith.sitofp %38 : vector<8x1xi32> to vector<8x1xf32>
    %c7_i32 = arith.constant 7 : i32
    %40 = vector.broadcast %c7_i32 : i32 to vector<8x1xi32>
    %41 = arith.cmpi sgt, %0, %40 : vector<8x1xi32>
    %42 = arith.extui %41 : vector<8x1xi1> to vector<8x1xi32>
    %43 = arith.sitofp %42 : vector<8x1xi32> to vector<8x1xf32>
    %44 = vector.shape_cast %3 : vector<1x32xi1> to vector<1x32xi1>
    %45 = vector.broadcast %44 : vector<1x32xi1> to vector<8x32xi1>
    %46 = vector.shape_cast %43 : vector<8x1xf32> to vector<8x1xf32>
    %47 = vector.broadcast %46 : vector<8x1xf32> to vector<8x32xf32>
    %48 = vector.shape_cast %39 : vector<8x1xf32> to vector<8x1xf32>
    %49 = vector.broadcast %48 : vector<8x1xf32> to vector<8x32xf32>
    %50 = arith.select %45, %47, %49 : vector<8x32xi1>, vector<8x32xf32>
    %51 = arith.mulf %50, %35 : vector<8x32xf32>
    %cst_11 = arith.constant 1.000000e+00 : f32
    %52 = vector.broadcast %cst_11 : f32 to vector<8x32xf32>
    %53 = arith.subf %52, %50 : vector<8x32xf32>
    %54 = arith.mulf %53, %5 : vector<8x32xf32>
    %55 = arith.addf %51, %54 : vector<8x32xf32>
    %56 = arith.mulf %50, %33 : vector<8x32xf32>
    %cst_12 = arith.constant 1.000000e+00 : f32
    %57 = vector.broadcast %cst_12 : f32 to vector<8x32xf32>
    %58 = arith.subf %57, %50 : vector<8x32xf32>
    %59 = arith.mulf %58, %6 : vector<8x32xf32>
    %60 = arith.addf %56, %59 : vector<8x32xf32>
    %61 = arith.mulf %50, %35 : vector<8x32xf32>
    %62 = vector.extract_strided_slice %61 {offsets = [0, 0], sizes = [8, 16], strides = [1, 1]} : vector<8x32xf32> to vector<8x16xf32>
    %c0_13 = arith.constant 0 : index
    %c0_14 = arith.constant 0 : index
    %c0_15 = arith.constant 0 : index
    %63 = vector.load %arg4[%c0_13, %c0_14, %c0_15] : memref<8x8x16xf32, #tpu.memory_space<vmem>>, vector<1x8x16xf32>
    %64 = vector.shape_cast %63 : vector<1x8x16xf32> to vector<8x16xf32>
    %65 = vector.shape_cast %62 : vector<8x16xf32> to vector<1x8x16xf32>
    tpu.vector_store %arg4[%c0_13, %c0_14, %c0_15], %65 {strides = array<i32>} : memref<8x8x16xf32, #tpu.memory_space<vmem>>, vector<1x8x16xf32>,
    %66 = vector.extract_strided_slice %61 {offsets = [0, 16], sizes = [8, 16], strides = [1, 1]} : vector<8x32xf32> to vector<8x16xf32>
    %c7 = arith.constant 7 : index
    %c0_16 = arith.constant 0 : index
    %c0_17 = arith.constant 0 : index
    %67 = vector.load %arg5[%c7, %c0_16, %c0_17] : memref<8x8x16xf32, #tpu.memory_space<vmem>>, vector<1x8x16xf32>
    %68 = vector.shape_cast %67 : vector<1x8x16xf32> to vector<8x16xf32>
    %69 = vector.shape_cast %66 : vector<8x16xf32> to vector<1x8x16xf32>
    tpu.vector_store %arg5[%c7, %c0_16, %c0_17], %69 {strides = array<i32>} : memref<8x8x16xf32, #tpu.memory_space<vmem>>, vector<1x8x16xf32>,
    %c1 = arith.constant 1 : index
    %c0_18 = arith.constant 0 : index
    %c0_19 = arith.constant 0 : index
    %70 = vector.load %arg2[%c1, %c0_18, %c0_19] : memref<8x8x128xf32, #tpu.memory_space<vmem>>, vector<1x8x128xf32>
    %71 = vector.shape_cast %70 : vector<1x8x128xf32> to vector<8x128xf32>
    %cst_20 = arith.constant dense<0.000000e+00> : vector<8x128xf32>
    %72 = tpu.matmul %55, %4, %cst_20 {dimension_numbers = #tpu.dot_dimension_numbers<[1], [0], [0], [1], [0, 0, 1, 1], [], []>} : vector<8x32xf32>, vector<32x128xf32>, vector<8x128xf32> -> vector<8x128xf32>
    %73 = arith.addf %71, %72 : vector<8x128xf32>
    %74 = vector.extract_strided_slice %73 {offsets = [0, 0], sizes = [8, 32], strides = [1, 1]} : vector<8x128xf32> to vector<8x32xf32>
    %75 = arith.negf %74 : vector<8x32xf32>
    %76 = math.exp %75 : vector<8x32xf32>
    %cst_21 = arith.constant 1.000000e+00 : f32
    %77 = vector.broadcast %cst_21 : f32 to vector<8x32xf32>
    %78 = arith.addf %77, %76 : vector<8x32xf32>
    %79 = arith.divf %77, %78 : vector<8x32xf32>
    %80 = vector.extract_strided_slice %73 {offsets = [0, 32], sizes = [8, 32], strides = [1, 1]} : vector<8x128xf32> to vector<8x32xf32>
    %81 = arith.negf %80 : vector<8x32xf32>
    %82 = math.exp %81 : vector<8x32xf32>
    %cst_22 = arith.constant 1.000000e+00 : f32
    %83 = vector.broadcast %cst_22 : f32 to vector<8x32xf32>
    %84 = arith.addf %83, %82 : vector<8x32xf32>
    %85 = arith.divf %83, %84 : vector<8x32xf32>
    %86 = vector.extract_strided_slice %73 {offsets = [0, 64], sizes = [8, 32], strides = [1, 1]} : vector<8x128xf32> to vector<8x32xf32>
    %87 = math.tanh %86 : vector<8x32xf32>
    %88 = vector.extract_strided_slice %73 {offsets = [0, 96], sizes = [8, 32], strides = [1, 1]} : vector<8x128xf32> to vector<8x32xf32>
    %89 = arith.negf %88 : vector<8x32xf32>
    %90 = math.exp %89 : vector<8x32xf32>
    %cst_23 = arith.constant 1.000000e+00 : f32
    %91 = vector.broadcast %cst_23 : f32 to vector<8x32xf32>
    %92 = arith.addf %91, %90 : vector<8x32xf32>
    %93 = arith.divf %91, %92 : vector<8x32xf32>
    %94 = arith.mulf %85, %60 : vector<8x32xf32>
    %95 = arith.mulf %79, %87 : vector<8x32xf32>
    %96 = arith.addf %94, %95 : vector<8x32xf32>
    %97 = math.tanh %96 : vector<8x32xf32>
    %98 = arith.mulf %93, %97 : vector<8x32xf32>
    %c1_i32 = arith.constant 1 : i32
    %99 = vector.broadcast %c1_i32 : i32 to vector<8x1xi32>
    %100 = arith.cmpi sgt, %0, %99 : vector<8x1xi32>
    %101 = arith.extui %100 : vector<8x1xi1> to vector<8x1xi32>
    %102 = arith.sitofp %101 : vector<8x1xi32> to vector<8x1xf32>
    %c6_i32 = arith.constant 6 : i32
    %103 = vector.broadcast %c6_i32 : i32 to vector<8x1xi32>
    %104 = arith.cmpi sgt, %0, %103 : vector<8x1xi32>
    %105 = arith.extui %104 : vector<8x1xi1> to vector<8x1xi32>
    %106 = arith.sitofp %105 : vector<8x1xi32> to vector<8x1xf32>
    %107 = vector.shape_cast %3 : vector<1x32xi1> to vector<1x32xi1>
    %108 = vector.broadcast %107 : vector<1x32xi1> to vector<8x32xi1>
    %109 = vector.shape_cast %106 : vector<8x1xf32> to vector<8x1xf32>
    %110 = vector.broadcast %109 : vector<8x1xf32> to vector<8x32xf32>
    %111 = vector.shape_cast %102 : vector<8x1xf32> to vector<8x1xf32>
    %112 = vector.broadcast %111 : vector<8x1xf32> to vector<8x32xf32>
    %113 = arith.select %108, %110, %112 : vector<8x32xi1>, vector<8x32xf32>
    %114 = arith.mulf %113, %98 : vector<8x32xf32>
    %cst_24 = arith.constant 1.000000e+00 : f32
    %115 = vector.broadcast %cst_24 : f32 to vector<8x32xf32>
    %116 = arith.subf %115, %113 : vector<8x32xf32>
    %117 = arith.mulf %116, %55 : vector<8x32xf32>
    %118 = arith.addf %114, %117 : vector<8x32xf32>
    %119 = arith.mulf %113, %96 : vector<8x32xf32>
    %cst_25 = arith.constant 1.000000e+00 : f32
    %120 = vector.broadcast %cst_25 : f32 to vector<8x32xf32>
    %121 = arith.subf %120, %113 : vector<8x32xf32>
    %122 = arith.mulf %121, %60 : vector<8x32xf32>
    %123 = arith.addf %119, %122 : vector<8x32xf32>
    %124 = arith.mulf %113, %98 : vector<8x32xf32>
    %125 = vector.extract_strided_slice %124 {offsets = [0, 0], sizes = [8, 16], strides = [1, 1]} : vector<8x32xf32> to vector<8x16xf32>
    %c1_26 = arith.constant 1 : index
    %c0_27 = arith.constant 0 : index
    %c0_28 = arith.constant 0 : index
    %126 = vector.load %arg4[%c1_26, %c0_27, %c0_28] : memref<8x8x16xf32, #tpu.memory_space<vmem>>, vector<1x8x16xf32>
    %127 = vector.shape_cast %126 : vector<1x8x16xf32> to vector<8x16xf32>
    %128 = vector.shape_cast %125 : vector<8x16xf32> to vector<1x8x16xf32>
    tpu.vector_store %arg4[%c1_26, %c0_27, %c0_28], %128 {strides = array<i32>} : memref<8x8x16xf32, #tpu.memory_space<vmem>>, vector<1x8x16xf32>,
    %129 = vector.extract_strided_slice %124 {offsets = [0, 16], sizes = [8, 16], strides = [1, 1]} : vector<8x32xf32> to vector<8x16xf32>
    %c6 = arith.constant 6 : index
    %c0_29 = arith.constant 0 : index
    %c0_30 = arith.constant 0 : index
    %130 = vector.load %arg5[%c6, %c0_29, %c0_30] : memref<8x8x16xf32, #tpu.memory_space<vmem>>, vector<1x8x16xf32>
    %131 = vector.shape_cast %130 : vector<1x8x16xf32> to vector<8x16xf32>
    %132 = vector.shape_cast %129 : vector<8x16xf32> to vector<1x8x16xf32>
    tpu.vector_store %arg5[%c6, %c0_29, %c0_30], %132 {strides = array<i32>} : memref<8x8x16xf32, #tpu.memory_space<vmem>>, vector<1x8x16xf32>,
    %c2 = arith.constant 2 : index
    %c0_31 = arith.constant 0 : index
    %c0_32 = arith.constant 0 : index
    %133 = vector.load %arg2[%c2, %c0_31, %c0_32] : memref<8x8x128xf32, #tpu.memory_space<vmem>>, vector<1x8x128xf32>
    %134 = vector.shape_cast %133 : vector<1x8x128xf32> to vector<8x128xf32>
    %cst_33 = arith.constant dense<0.000000e+00> : vector<8x128xf32>
    %135 = tpu.matmul %118, %4, %cst_33 {dimension_numbers = #tpu.dot_dimension_numbers<[1], [0], [0], [1], [0, 0, 1, 1], [], []>} : vector<8x32xf32>, vector<32x128xf32>, vector<8x128xf32> -> vector<8x128xf32>
    %136 = arith.addf %134, %135 : vector<8x128xf32>
    %137 = vector.extract_strided_slice %136 {offsets = [0, 0], sizes = [8, 32], strides = [1, 1]} : vector<8x128xf32> to vector<8x32xf32>
    %138 = arith.negf %137 : vector<8x32xf32>
    %139 = math.exp %138 : vector<8x32xf32>
    %cst_34 = arith.constant 1.000000e+00 : f32
    %140 = vector.broadcast %cst_34 : f32 to vector<8x32xf32>
    %141 = arith.addf %140, %139 : vector<8x32xf32>
    %142 = arith.divf %140, %141 : vector<8x32xf32>
    %143 = vector.extract_strided_slice %136 {offsets = [0, 32], sizes = [8, 32], strides = [1, 1]} : vector<8x128xf32> to vector<8x32xf32>
    %144 = arith.negf %143 : vector<8x32xf32>
    %145 = math.exp %144 : vector<8x32xf32>
    %cst_35 = arith.constant 1.000000e+00 : f32
    %146 = vector.broadcast %cst_35 : f32 to vector<8x32xf32>
    %147 = arith.addf %146, %145 : vector<8x32xf32>
    %148 = arith.divf %146, %147 : vector<8x32xf32>
    %149 = vector.extract_strided_slice %136 {offsets = [0, 64], sizes = [8, 32], strides = [1, 1]} : vector<8x128xf32> to vector<8x32xf32>
    %150 = math.tanh %149 : vector<8x32xf32>
    %151 = vector.extract_strided_slice %136 {offsets = [0, 96], sizes = [8, 32], strides = [1, 1]} : vector<8x128xf32> to vector<8x32xf32>
    %152 = arith.negf %151 : vector<8x32xf32>
    %153 = math.exp %152 : vector<8x32xf32>
    %cst_36 = arith.constant 1.000000e+00 : f32
    %154 = vector.broadcast %cst_36 : f32 to vector<8x32xf32>
    %155 = arith.addf %154, %153 : vector<8x32xf32>
    %156 = arith.divf %154, %155 : vector<8x32xf32>
    %157 = arith.mulf %148, %123 : vector<8x32xf32>
    %158 = arith.mulf %142, %150 : vector<8x32xf32>
    %159 = arith.addf %157, %158 : vector<8x32xf32>
    %160 = math.tanh %159 : vector<8x32xf32>
    %161 = arith.mulf %156, %160 : vector<8x32xf32>
    %c2_i32 = arith.constant 2 : i32
    %162 = vector.broadcast %c2_i32 : i32 to vector<8x1xi32>
    %163 = arith.cmpi sgt, %0, %162 : vector<8x1xi32>
    %164 = arith.extui %163 : vector<8x1xi1> to vector<8x1xi32>
    %165 = arith.sitofp %164 : vector<8x1xi32> to vector<8x1xf32>
    %c5_i32 = arith.constant 5 : i32
    %166 = vector.broadcast %c5_i32 : i32 to vector<8x1xi32>
    %167 = arith.cmpi sgt, %0, %166 : vector<8x1xi32>
    %168 = arith.extui %167 : vector<8x1xi1> to vector<8x1xi32>
    %169 = arith.sitofp %168 : vector<8x1xi32> to vector<8x1xf32>
    %170 = vector.shape_cast %3 : vector<1x32xi1> to vector<1x32xi1>
    %171 = vector.broadcast %170 : vector<1x32xi1> to vector<8x32xi1>
    %172 = vector.shape_cast %169 : vector<8x1xf32> to vector<8x1xf32>
    %173 = vector.broadcast %172 : vector<8x1xf32> to vector<8x32xf32>
    %174 = vector.shape_cast %165 : vector<8x1xf32> to vector<8x1xf32>
    %175 = vector.broadcast %174 : vector<8x1xf32> to vector<8x32xf32>
    %176 = arith.select %171, %173, %175 : vector<8x32xi1>, vector<8x32xf32>
    %177 = arith.mulf %176, %161 : vector<8x32xf32>
    %cst_37 = arith.constant 1.000000e+00 : f32
    %178 = vector.broadcast %cst_37 : f32 to vector<8x32xf32>
    %179 = arith.subf %178, %176 : vector<8x32xf32>
    %180 = arith.mulf %179, %118 : vector<8x32xf32>
    %181 = arith.addf %177, %180 : vector<8x32xf32>
    %182 = arith.mulf %176, %159 : vector<8x32xf32>
    %cst_38 = arith.constant 1.000000e+00 : f32
    %183 = vector.broadcast %cst_38 : f32 to vector<8x32xf32>
    %184 = arith.subf %183, %176 : vector<8x32xf32>
    %185 = arith.mulf %184, %123 : vector<8x32xf32>
    %186 = arith.addf %182, %185 : vector<8x32xf32>
    %187 = arith.mulf %176, %161 : vector<8x32xf32>
    %188 = vector.extract_strided_slice %187 {offsets = [0, 0], sizes = [8, 16], strides = [1, 1]} : vector<8x32xf32> to vector<8x16xf32>
    %c2_39 = arith.constant 2 : index
    %c0_40 = arith.constant 0 : index
    %c0_41 = arith.constant 0 : index
    %189 = vector.load %arg4[%c2_39, %c0_40, %c0_41] : memref<8x8x16xf32, #tpu.memory_space<vmem>>, vector<1x8x16xf32>
    %190 = vector.shape_cast %189 : vector<1x8x16xf32> to vector<8x16xf32>
    %191 = vector.shape_cast %188 : vector<8x16xf32> to vector<1x8x16xf32>
    tpu.vector_store %arg4[%c2_39, %c0_40, %c0_41], %191 {strides = array<i32>} : memref<8x8x16xf32, #tpu.memory_space<vmem>>, vector<1x8x16xf32>,
    %192 = vector.extract_strided_slice %187 {offsets = [0, 16], sizes = [8, 16], strides = [1, 1]} : vector<8x32xf32> to vector<8x16xf32>
    %c5 = arith.constant 5 : index
    %c0_42 = arith.constant 0 : index
    %c0_43 = arith.constant 0 : index
    %193 = vector.load %arg5[%c5, %c0_42, %c0_43] : memref<8x8x16xf32, #tpu.memory_space<vmem>>, vector<1x8x16xf32>
    %194 = vector.shape_cast %193 : vector<1x8x16xf32> to vector<8x16xf32>
    %195 = vector.shape_cast %192 : vector<8x16xf32> to vector<1x8x16xf32>
    tpu.vector_store %arg5[%c5, %c0_42, %c0_43], %195 {strides = array<i32>} : memref<8x8x16xf32, #tpu.memory_space<vmem>>, vector<1x8x16xf32>,
    %c3 = arith.constant 3 : index
    %c0_44 = arith.constant 0 : index
    %c0_45 = arith.constant 0 : index
    %196 = vector.load %arg2[%c3, %c0_44, %c0_45] : memref<8x8x128xf32, #tpu.memory_space<vmem>>, vector<1x8x128xf32>
    %197 = vector.shape_cast %196 : vector<1x8x128xf32> to vector<8x128xf32>
    %cst_46 = arith.constant dense<0.000000e+00> : vector<8x128xf32>
    %198 = tpu.matmul %181, %4, %cst_46 {dimension_numbers = #tpu.dot_dimension_numbers<[1], [0], [0], [1], [0, 0, 1, 1], [], []>} : vector<8x32xf32>, vector<32x128xf32>, vector<8x128xf32> -> vector<8x128xf32>
    %199 = arith.addf %197, %198 : vector<8x128xf32>
    %200 = vector.extract_strided_slice %199 {offsets = [0, 0], sizes = [8, 32], strides = [1, 1]} : vector<8x128xf32> to vector<8x32xf32>
    %201 = arith.negf %200 : vector<8x32xf32>
    %202 = math.exp %201 : vector<8x32xf32>
    %cst_47 = arith.constant 1.000000e+00 : f32
    %203 = vector.broadcast %cst_47 : f32 to vector<8x32xf32>
    %204 = arith.addf %203, %202 : vector<8x32xf32>
    %205 = arith.divf %203, %204 : vector<8x32xf32>
    %206 = vector.extract_strided_slice %199 {offsets = [0, 32], sizes = [8, 32], strides = [1, 1]} : vector<8x128xf32> to vector<8x32xf32>
    %207 = arith.negf %206 : vector<8x32xf32>
    %208 = math.exp %207 : vector<8x32xf32>
    %cst_48 = arith.constant 1.000000e+00 : f32
    %209 = vector.broadcast %cst_48 : f32 to vector<8x32xf32>
    %210 = arith.addf %209, %208 : vector<8x32xf32>
    %211 = arith.divf %209, %210 : vector<8x32xf32>
    %212 = vector.extract_strided_slice %199 {offsets = [0, 64], sizes = [8, 32], strides = [1, 1]} : vector<8x128xf32> to vector<8x32xf32>
    %213 = math.tanh %212 : vector<8x32xf32>
    %214 = vector.extract_strided_slice %199 {offsets = [0, 96], sizes = [8, 32], strides = [1, 1]} : vector<8x128xf32> to vector<8x32xf32>
    %215 = arith.negf %214 : vector<8x32xf32>
    %216 = math.exp %215 : vector<8x32xf32>
    %cst_49 = arith.constant 1.000000e+00 : f32
    %217 = vector.broadcast %cst_49 : f32 to vector<8x32xf32>
    %218 = arith.addf %217, %216 : vector<8x32xf32>
    %219 = arith.divf %217, %218 : vector<8x32xf32>
    %220 = arith.mulf %211, %186 : vector<8x32xf32>
    %221 = arith.mulf %205, %213 : vector<8x32xf32>
    %222 = arith.addf %220, %221 : vector<8x32xf32>
    %223 = math.tanh %222 : vector<8x32xf32>
    %224 = arith.mulf %219, %223 : vector<8x32xf32>
    %c3_i32 = arith.constant 3 : i32
    %225 = vector.broadcast %c3_i32 : i32 to vector<8x1xi32>
    %226 = arith.cmpi sgt, %0, %225 : vector<8x1xi32>
    %227 = arith.extui %226 : vector<8x1xi1> to vector<8x1xi32>
    %228 = arith.sitofp %227 : vector<8x1xi32> to vector<8x1xf32>
    %c4_i32 = arith.constant 4 : i32
    %229 = vector.broadcast %c4_i32 : i32 to vector<8x1xi32>
    %230 = arith.cmpi sgt, %0, %229 : vector<8x1xi32>
    %231 = arith.extui %230 : vector<8x1xi1> to vector<8x1xi32>
    %232 = arith.sitofp %231 : vector<8x1xi32> to vector<8x1xf32>
    %233 = vector.shape_cast %3 : vector<1x32xi1> to vector<1x32xi1>
    %234 = vector.broadcast %233 : vector<1x32xi1> to vector<8x32xi1>
    %235 = vector.shape_cast %232 : vector<8x1xf32> to vector<8x1xf32>
    %236 = vector.broadcast %235 : vector<8x1xf32> to vector<8x32xf32>
    %237 = vector.shape_cast %228 : vector<8x1xf32> to vector<8x1xf32>
    %238 = vector.broadcast %237 : vector<8x1xf32> to vector<8x32xf32>
    %239 = arith.select %234, %236, %238 : vector<8x32xi1>, vector<8x32xf32>
    %240 = arith.mulf %239, %224 : vector<8x32xf32>
    %cst_50 = arith.constant 1.000000e+00 : f32
    %241 = vector.broadcast %cst_50 : f32 to vector<8x32xf32>
    %242 = arith.subf %241, %239 : vector<8x32xf32>
    %243 = arith.mulf %242, %181 : vector<8x32xf32>
    %244 = arith.addf %240, %243 : vector<8x32xf32>
    %245 = arith.mulf %239, %222 : vector<8x32xf32>
    %cst_51 = arith.constant 1.000000e+00 : f32
    %246 = vector.broadcast %cst_51 : f32 to vector<8x32xf32>
    %247 = arith.subf %246, %239 : vector<8x32xf32>
    %248 = arith.mulf %247, %186 : vector<8x32xf32>
    %249 = arith.addf %245, %248 : vector<8x32xf32>
    %250 = arith.mulf %239, %224 : vector<8x32xf32>
    %251 = vector.extract_strided_slice %250 {offsets = [0, 0], sizes = [8, 16], strides = [1, 1]} : vector<8x32xf32> to vector<8x16xf32>
    %c3_52 = arith.constant 3 : index
    %c0_53 = arith.constant 0 : index
    %c0_54 = arith.constant 0 : index
    %252 = vector.load %arg4[%c3_52, %c0_53, %c0_54] : memref<8x8x16xf32, #tpu.memory_space<vmem>>, vector<1x8x16xf32>
    %253 = vector.shape_cast %252 : vector<1x8x16xf32> to vector<8x16xf32>
    %254 = vector.shape_cast %251 : vector<8x16xf32> to vector<1x8x16xf32>
    tpu.vector_store %arg4[%c3_52, %c0_53, %c0_54], %254 {strides = array<i32>} : memref<8x8x16xf32, #tpu.memory_space<vmem>>, vector<1x8x16xf32>,
    %255 = vector.extract_strided_slice %250 {offsets = [0, 16], sizes = [8, 16], strides = [1, 1]} : vector<8x32xf32> to vector<8x16xf32>
    %c4 = arith.constant 4 : index
    %c0_55 = arith.constant 0 : index
    %c0_56 = arith.constant 0 : index
    %256 = vector.load %arg5[%c4, %c0_55, %c0_56] : memref<8x8x16xf32, #tpu.memory_space<vmem>>, vector<1x8x16xf32>
    %257 = vector.shape_cast %256 : vector<1x8x16xf32> to vector<8x16xf32>
    %258 = vector.shape_cast %255 : vector<8x16xf32> to vector<1x8x16xf32>
    tpu.vector_store %arg5[%c4, %c0_55, %c0_56], %258 {strides = array<i32>} : memref<8x8x16xf32, #tpu.memory_space<vmem>>, vector<1x8x16xf32>,
    %c4_57 = arith.constant 4 : index
    %c0_58 = arith.constant 0 : index
    %c0_59 = arith.constant 0 : index
    %259 = vector.load %arg2[%c4_57, %c0_58, %c0_59] : memref<8x8x128xf32, #tpu.memory_space<vmem>>, vector<1x8x128xf32>
    %260 = vector.shape_cast %259 : vector<1x8x128xf32> to vector<8x128xf32>
    %cst_60 = arith.constant dense<0.000000e+00> : vector<8x128xf32>
    %261 = tpu.matmul %244, %4, %cst_60 {dimension_numbers = #tpu.dot_dimension_numbers<[1], [0], [0], [1], [0, 0, 1, 1], [], []>} : vector<8x32xf32>, vector<32x128xf32>, vector<8x128xf32> -> vector<8x128xf32>
    %262 = arith.addf %260, %261 : vector<8x128xf32>
    %263 = vector.extract_strided_slice %262 {offsets = [0, 0], sizes = [8, 32], strides = [1, 1]} : vector<8x128xf32> to vector<8x32xf32>
    %264 = arith.negf %263 : vector<8x32xf32>
    %265 = math.exp %264 : vector<8x32xf32>
    %cst_61 = arith.constant 1.000000e+00 : f32
    %266 = vector.broadcast %cst_61 : f32 to vector<8x32xf32>
    %267 = arith.addf %266, %265 : vector<8x32xf32>
    %268 = arith.divf %266, %267 : vector<8x32xf32>
    %269 = vector.extract_strided_slice %262 {offsets = [0, 32], sizes = [8, 32], strides = [1, 1]} : vector<8x128xf32> to vector<8x32xf32>
    %270 = arith.negf %269 : vector<8x32xf32>
    %271 = math.exp %270 : vector<8x32xf32>
    %cst_62 = arith.constant 1.000000e+00 : f32
    %272 = vector.broadcast %cst_62 : f32 to vector<8x32xf32>
    %273 = arith.addf %272, %271 : vector<8x32xf32>
    %274 = arith.divf %272, %273 : vector<8x32xf32>
    %275 = vector.extract_strided_slice %262 {offsets = [0, 64], sizes = [8, 32], strides = [1, 1]} : vector<8x128xf32> to vector<8x32xf32>
    %276 = math.tanh %275 : vector<8x32xf32>
    %277 = vector.extract_strided_slice %262 {offsets = [0, 96], sizes = [8, 32], strides = [1, 1]} : vector<8x128xf32> to vector<8x32xf32>
    %278 = arith.negf %277 : vector<8x32xf32>
    %279 = math.exp %278 : vector<8x32xf32>
    %cst_63 = arith.constant 1.000000e+00 : f32
    %280 = vector.broadcast %cst_63 : f32 to vector<8x32xf32>
    %281 = arith.addf %280, %279 : vector<8x32xf32>
    %282 = arith.divf %280, %281 : vector<8x32xf32>
    %283 = arith.mulf %274, %249 : vector<8x32xf32>
    %284 = arith.mulf %268, %276 : vector<8x32xf32>
    %285 = arith.addf %283, %284 : vector<8x32xf32>
    %286 = math.tanh %285 : vector<8x32xf32>
    %287 = arith.mulf %282, %286 : vector<8x32xf32>
    %c4_i32_64 = arith.constant 4 : i32
    %288 = vector.broadcast %c4_i32_64 : i32 to vector<8x1xi32>
    %289 = arith.cmpi sgt, %0, %288 : vector<8x1xi32>
    %290 = arith.extui %289 : vector<8x1xi1> to vector<8x1xi32>
    %291 = arith.sitofp %290 : vector<8x1xi32> to vector<8x1xf32>
    %c3_i32_65 = arith.constant 3 : i32
    %292 = vector.broadcast %c3_i32_65 : i32 to vector<8x1xi32>
    %293 = arith.cmpi sgt, %0, %292 : vector<8x1xi32>
    %294 = arith.extui %293 : vector<8x1xi1> to vector<8x1xi32>
    %295 = arith.sitofp %294 : vector<8x1xi32> to vector<8x1xf32>
    %296 = vector.shape_cast %3 : vector<1x32xi1> to vector<1x32xi1>
    %297 = vector.broadcast %296 : vector<1x32xi1> to vector<8x32xi1>
    %298 = vector.shape_cast %295 : vector<8x1xf32> to vector<8x1xf32>
    %299 = vector.broadcast %298 : vector<8x1xf32> to vector<8x32xf32>
    %300 = vector.shape_cast %291 : vector<8x1xf32> to vector<8x1xf32>
    %301 = vector.broadcast %300 : vector<8x1xf32> to vector<8x32xf32>
    %302 = arith.select %297, %299, %301 : vector<8x32xi1>, vector<8x32xf32>
    %303 = arith.mulf %302, %287 : vector<8x32xf32>
    %cst_66 = arith.constant 1.000000e+00 : f32
    %304 = vector.broadcast %cst_66 : f32 to vector<8x32xf32>
    %305 = arith.subf %304, %302 : vector<8x32xf32>
    %306 = arith.mulf %305, %244 : vector<8x32xf32>
    %307 = arith.addf %303, %306 : vector<8x32xf32>
    %308 = arith.mulf %302, %285 : vector<8x32xf32>
    %cst_67 = arith.constant 1.000000e+00 : f32
    %309 = vector.broadcast %cst_67 : f32 to vector<8x32xf32>
    %310 = arith.subf %309, %302 : vector<8x32xf32>
    %311 = arith.mulf %310, %249 : vector<8x32xf32>
    %312 = arith.addf %308, %311 : vector<8x32xf32>
    %313 = arith.mulf %302, %287 : vector<8x32xf32>
    %314 = vector.extract_strided_slice %313 {offsets = [0, 0], sizes = [8, 16], strides = [1, 1]} : vector<8x32xf32> to vector<8x16xf32>
    %c4_68 = arith.constant 4 : index
    %c0_69 = arith.constant 0 : index
    %c0_70 = arith.constant 0 : index
    %315 = vector.load %arg4[%c4_68, %c0_69, %c0_70] : memref<8x8x16xf32, #tpu.memory_space<vmem>>, vector<1x8x16xf32>
    %316 = vector.shape_cast %315 : vector<1x8x16xf32> to vector<8x16xf32>
    %317 = vector.shape_cast %314 : vector<8x16xf32> to vector<1x8x16xf32>
    tpu.vector_store %arg4[%c4_68, %c0_69, %c0_70], %317 {strides = array<i32>} : memref<8x8x16xf32, #tpu.memory_space<vmem>>, vector<1x8x16xf32>,
    %318 = vector.extract_strided_slice %313 {offsets = [0, 16], sizes = [8, 16], strides = [1, 1]} : vector<8x32xf32> to vector<8x16xf32>
    %c3_71 = arith.constant 3 : index
    %c0_72 = arith.constant 0 : index
    %c0_73 = arith.constant 0 : index
    %319 = vector.load %arg5[%c3_71, %c0_72, %c0_73] : memref<8x8x16xf32, #tpu.memory_space<vmem>>, vector<1x8x16xf32>
    %320 = vector.shape_cast %319 : vector<1x8x16xf32> to vector<8x16xf32>
    %321 = vector.shape_cast %318 : vector<8x16xf32> to vector<1x8x16xf32>
    tpu.vector_store %arg5[%c3_71, %c0_72, %c0_73], %321 {strides = array<i32>} : memref<8x8x16xf32, #tpu.memory_space<vmem>>, vector<1x8x16xf32>,
    %c5_74 = arith.constant 5 : index
    %c0_75 = arith.constant 0 : index
    %c0_76 = arith.constant 0 : index
    %322 = vector.load %arg2[%c5_74, %c0_75, %c0_76] : memref<8x8x128xf32, #tpu.memory_space<vmem>>, vector<1x8x128xf32>
    %323 = vector.shape_cast %322 : vector<1x8x128xf32> to vector<8x128xf32>
    %cst_77 = arith.constant dense<0.000000e+00> : vector<8x128xf32>
    %324 = tpu.matmul %307, %4, %cst_77 {dimension_numbers = #tpu.dot_dimension_numbers<[1], [0], [0], [1], [0, 0, 1, 1], [], []>} : vector<8x32xf32>, vector<32x128xf32>, vector<8x128xf32> -> vector<8x128xf32>
    %325 = arith.addf %323, %324 : vector<8x128xf32>
    %326 = vector.extract_strided_slice %325 {offsets = [0, 0], sizes = [8, 32], strides = [1, 1]} : vector<8x128xf32> to vector<8x32xf32>
    %327 = arith.negf %326 : vector<8x32xf32>
    %328 = math.exp %327 : vector<8x32xf32>
    %cst_78 = arith.constant 1.000000e+00 : f32
    %329 = vector.broadcast %cst_78 : f32 to vector<8x32xf32>
    %330 = arith.addf %329, %328 : vector<8x32xf32>
    %331 = arith.divf %329, %330 : vector<8x32xf32>
    %332 = vector.extract_strided_slice %325 {offsets = [0, 32], sizes = [8, 32], strides = [1, 1]} : vector<8x128xf32> to vector<8x32xf32>
    %333 = arith.negf %332 : vector<8x32xf32>
    %334 = math.exp %333 : vector<8x32xf32>
    %cst_79 = arith.constant 1.000000e+00 : f32
    %335 = vector.broadcast %cst_79 : f32 to vector<8x32xf32>
    %336 = arith.addf %335, %334 : vector<8x32xf32>
    %337 = arith.divf %335, %336 : vector<8x32xf32>
    %338 = vector.extract_strided_slice %325 {offsets = [0, 64], sizes = [8, 32], strides = [1, 1]} : vector<8x128xf32> to vector<8x32xf32>
    %339 = math.tanh %338 : vector<8x32xf32>
    %340 = vector.extract_strided_slice %325 {offsets = [0, 96], sizes = [8, 32], strides = [1, 1]} : vector<8x128xf32> to vector<8x32xf32>
    %341 = arith.negf %340 : vector<8x32xf32>
    %342 = math.exp %341 : vector<8x32xf32>
    %cst_80 = arith.constant 1.000000e+00 : f32
    %343 = vector.broadcast %cst_80 : f32 to vector<8x32xf32>
    %344 = arith.addf %343, %342 : vector<8x32xf32>
    %345 = arith.divf %343, %344 : vector<8x32xf32>
    %346 = arith.mulf %337, %312 : vector<8x32xf32>
    %347 = arith.mulf %331, %339 : vector<8x32xf32>
    %348 = arith.addf %346, %347 : vector<8x32xf32>
    %349 = math.tanh %348 : vector<8x32xf32>
    %350 = arith.mulf %345, %349 : vector<8x32xf32>
    %c5_i32_81 = arith.constant 5 : i32
    %351 = vector.broadcast %c5_i32_81 : i32 to vector<8x1xi32>
    %352 = arith.cmpi sgt, %0, %351 : vector<8x1xi32>
    %353 = arith.extui %352 : vector<8x1xi1> to vector<8x1xi32>
    %354 = arith.sitofp %353 : vector<8x1xi32> to vector<8x1xf32>
    %c2_i32_82 = arith.constant 2 : i32
    %355 = vector.broadcast %c2_i32_82 : i32 to vector<8x1xi32>
    %356 = arith.cmpi sgt, %0, %355 : vector<8x1xi32>
    %357 = arith.extui %356 : vector<8x1xi1> to vector<8x1xi32>
    %358 = arith.sitofp %357 : vector<8x1xi32> to vector<8x1xf32>
    %359 = vector.shape_cast %3 : vector<1x32xi1> to vector<1x32xi1>
    %360 = vector.broadcast %359 : vector<1x32xi1> to vector<8x32xi1>
    %361 = vector.shape_cast %358 : vector<8x1xf32> to vector<8x1xf32>
    %362 = vector.broadcast %361 : vector<8x1xf32> to vector<8x32xf32>
    %363 = vector.shape_cast %354 : vector<8x1xf32> to vector<8x1xf32>
    %364 = vector.broadcast %363 : vector<8x1xf32> to vector<8x32xf32>
    %365 = arith.select %360, %362, %364 : vector<8x32xi1>, vector<8x32xf32>
    %366 = arith.mulf %365, %350 : vector<8x32xf32>
    %cst_83 = arith.constant 1.000000e+00 : f32
    %367 = vector.broadcast %cst_83 : f32 to vector<8x32xf32>
    %368 = arith.subf %367, %365 : vector<8x32xf32>
    %369 = arith.mulf %368, %307 : vector<8x32xf32>
    %370 = arith.addf %366, %369 : vector<8x32xf32>
    %371 = arith.mulf %365, %348 : vector<8x32xf32>
    %cst_84 = arith.constant 1.000000e+00 : f32
    %372 = vector.broadcast %cst_84 : f32 to vector<8x32xf32>
    %373 = arith.subf %372, %365 : vector<8x32xf32>
    %374 = arith.mulf %373, %312 : vector<8x32xf32>
    %375 = arith.addf %371, %374 : vector<8x32xf32>
    %376 = arith.mulf %365, %350 : vector<8x32xf32>
    %377 = vector.extract_strided_slice %376 {offsets = [0, 0], sizes = [8, 16], strides = [1, 1]} : vector<8x32xf32> to vector<8x16xf32>
    %c5_85 = arith.constant 5 : index
    %c0_86 = arith.constant 0 : index
    %c0_87 = arith.constant 0 : index
    %378 = vector.load %arg4[%c5_85, %c0_86, %c0_87] : memref<8x8x16xf32, #tpu.memory_space<vmem>>, vector<1x8x16xf32>
    %379 = vector.shape_cast %378 : vector<1x8x16xf32> to vector<8x16xf32>
    %380 = vector.shape_cast %377 : vector<8x16xf32> to vector<1x8x16xf32>
    tpu.vector_store %arg4[%c5_85, %c0_86, %c0_87], %380 {strides = array<i32>} : memref<8x8x16xf32, #tpu.memory_space<vmem>>, vector<1x8x16xf32>,
    %381 = vector.extract_strided_slice %376 {offsets = [0, 16], sizes = [8, 16], strides = [1, 1]} : vector<8x32xf32> to vector<8x16xf32>
    %c2_88 = arith.constant 2 : index
    %c0_89 = arith.constant 0 : index
    %c0_90 = arith.constant 0 : index
    %382 = vector.load %arg5[%c2_88, %c0_89, %c0_90] : memref<8x8x16xf32, #tpu.memory_space<vmem>>, vector<1x8x16xf32>
    %383 = vector.shape_cast %382 : vector<1x8x16xf32> to vector<8x16xf32>
    %384 = vector.shape_cast %381 : vector<8x16xf32> to vector<1x8x16xf32>
    tpu.vector_store %arg5[%c2_88, %c0_89, %c0_90], %384 {strides = array<i32>} : memref<8x8x16xf32, #tpu.memory_space<vmem>>, vector<1x8x16xf32>,
    %c6_91 = arith.constant 6 : index
    %c0_92 = arith.constant 0 : index
    %c0_93 = arith.constant 0 : index
    %385 = vector.load %arg2[%c6_91, %c0_92, %c0_93] : memref<8x8x128xf32, #tpu.memory_space<vmem>>, vector<1x8x128xf32>
    %386 = vector.shape_cast %385 : vector<1x8x128xf32> to vector<8x128xf32>
    %cst_94 = arith.constant dense<0.000000e+00> : vector<8x128xf32>
    %387 = tpu.matmul %370, %4, %cst_94 {dimension_numbers = #tpu.dot_dimension_numbers<[1], [0], [0], [1], [0, 0, 1, 1], [], []>} : vector<8x32xf32>, vector<32x128xf32>, vector<8x128xf32> -> vector<8x128xf32>
    %388 = arith.addf %386, %387 : vector<8x128xf32>
    %389 = vector.extract_strided_slice %388 {offsets = [0, 0], sizes = [8, 32], strides = [1, 1]} : vector<8x128xf32> to vector<8x32xf32>
    %390 = arith.negf %389 : vector<8x32xf32>
    %391 = math.exp %390 : vector<8x32xf32>
    %cst_95 = arith.constant 1.000000e+00 : f32
    %392 = vector.broadcast %cst_95 : f32 to vector<8x32xf32>
    %393 = arith.addf %392, %391 : vector<8x32xf32>
    %394 = arith.divf %392, %393 : vector<8x32xf32>
    %395 = vector.extract_strided_slice %388 {offsets = [0, 32], sizes = [8, 32], strides = [1, 1]} : vector<8x128xf32> to vector<8x32xf32>
    %396 = arith.negf %395 : vector<8x32xf32>
    %397 = math.exp %396 : vector<8x32xf32>
    %cst_96 = arith.constant 1.000000e+00 : f32
    %398 = vector.broadcast %cst_96 : f32 to vector<8x32xf32>
    %399 = arith.addf %398, %397 : vector<8x32xf32>
    %400 = arith.divf %398, %399 : vector<8x32xf32>
    %401 = vector.extract_strided_slice %388 {offsets = [0, 64], sizes = [8, 32], strides = [1, 1]} : vector<8x128xf32> to vector<8x32xf32>
    %402 = math.tanh %401 : vector<8x32xf32>
    %403 = vector.extract_strided_slice %388 {offsets = [0, 96], sizes = [8, 32], strides = [1, 1]} : vector<8x128xf32> to vector<8x32xf32>
    %404 = arith.negf %403 : vector<8x32xf32>
    %405 = math.exp %404 : vector<8x32xf32>
    %cst_97 = arith.constant 1.000000e+00 : f32
    %406 = vector.broadcast %cst_97 : f32 to vector<8x32xf32>
    %407 = arith.addf %406, %405 : vector<8x32xf32>
    %408 = arith.divf %406, %407 : vector<8x32xf32>
    %409 = arith.mulf %400, %375 : vector<8x32xf32>
    %410 = arith.mulf %394, %402 : vector<8x32xf32>
    %411 = arith.addf %409, %410 : vector<8x32xf32>
    %412 = math.tanh %411 : vector<8x32xf32>
    %413 = arith.mulf %408, %412 : vector<8x32xf32>
    %c6_i32_98 = arith.constant 6 : i32
    %414 = vector.broadcast %c6_i32_98 : i32 to vector<8x1xi32>
    %415 = arith.cmpi sgt, %0, %414 : vector<8x1xi32>
    %416 = arith.extui %415 : vector<8x1xi1> to vector<8x1xi32>
    %417 = arith.sitofp %416 : vector<8x1xi32> to vector<8x1xf32>
    %c1_i32_99 = arith.constant 1 : i32
    %418 = vector.broadcast %c1_i32_99 : i32 to vector<8x1xi32>
    %419 = arith.cmpi sgt, %0, %418 : vector<8x1xi32>
    %420 = arith.extui %419 : vector<8x1xi1> to vector<8x1xi32>
    %421 = arith.sitofp %420 : vector<8x1xi32> to vector<8x1xf32>
    %422 = vector.shape_cast %3 : vector<1x32xi1> to vector<1x32xi1>
    %423 = vector.broadcast %422 : vector<1x32xi1> to vector<8x32xi1>
    %424 = vector.shape_cast %421 : vector<8x1xf32> to vector<8x1xf32>
    %425 = vector.broadcast %424 : vector<8x1xf32> to vector<8x32xf32>
    %426 = vector.shape_cast %417 : vector<8x1xf32> to vector<8x1xf32>
    %427 = vector.broadcast %426 : vector<8x1xf32> to vector<8x32xf32>
    %428 = arith.select %423, %425, %427 : vector<8x32xi1>, vector<8x32xf32>
    %429 = arith.mulf %428, %413 : vector<8x32xf32>
    %cst_100 = arith.constant 1.000000e+00 : f32
    %430 = vector.broadcast %cst_100 : f32 to vector<8x32xf32>
    %431 = arith.subf %430, %428 : vector<8x32xf32>
    %432 = arith.mulf %431, %370 : vector<8x32xf32>
    %433 = arith.addf %429, %432 : vector<8x32xf32>
    %434 = arith.mulf %428, %411 : vector<8x32xf32>
    %cst_101 = arith.constant 1.000000e+00 : f32
    %435 = vector.broadcast %cst_101 : f32 to vector<8x32xf32>
    %436 = arith.subf %435, %428 : vector<8x32xf32>
    %437 = arith.mulf %436, %375 : vector<8x32xf32>
    %438 = arith.addf %434, %437 : vector<8x32xf32>
    %439 = arith.mulf %428, %413 : vector<8x32xf32>
    %440 = vector.extract_strided_slice %439 {offsets = [0, 0], sizes = [8, 16], strides = [1, 1]} : vector<8x32xf32> to vector<8x16xf32>
    %c6_102 = arith.constant 6 : index
    %c0_103 = arith.constant 0 : index
    %c0_104 = arith.constant 0 : index
    %441 = vector.load %arg4[%c6_102, %c0_103, %c0_104] : memref<8x8x16xf32, #tpu.memory_space<vmem>>, vector<1x8x16xf32>
    %442 = vector.shape_cast %441 : vector<1x8x16xf32> to vector<8x16xf32>
    %443 = vector.shape_cast %440 : vector<8x16xf32> to vector<1x8x16xf32>
    tpu.vector_store %arg4[%c6_102, %c0_103, %c0_104], %443 {strides = array<i32>} : memref<8x8x16xf32, #tpu.memory_space<vmem>>, vector<1x8x16xf32>,
    %444 = vector.extract_strided_slice %439 {offsets = [0, 16], sizes = [8, 16], strides = [1, 1]} : vector<8x32xf32> to vector<8x16xf32>
    %c1_105 = arith.constant 1 : index
    %c0_106 = arith.constant 0 : index
    %c0_107 = arith.constant 0 : index
    %445 = vector.load %arg5[%c1_105, %c0_106, %c0_107] : memref<8x8x16xf32, #tpu.memory_space<vmem>>, vector<1x8x16xf32>
    %446 = vector.shape_cast %445 : vector<1x8x16xf32> to vector<8x16xf32>
    %447 = vector.shape_cast %444 : vector<8x16xf32> to vector<1x8x16xf32>
    tpu.vector_store %arg5[%c1_105, %c0_106, %c0_107], %447 {strides = array<i32>} : memref<8x8x16xf32, #tpu.memory_space<vmem>>, vector<1x8x16xf32>,
    %c7_108 = arith.constant 7 : index
    %c0_109 = arith.constant 0 : index
    %c0_110 = arith.constant 0 : index
    %448 = vector.load %arg2[%c7_108, %c0_109, %c0_110] : memref<8x8x128xf32, #tpu.memory_space<vmem>>, vector<1x8x128xf32>
    %449 = vector.shape_cast %448 : vector<1x8x128xf32> to vector<8x128xf32>
    %cst_111 = arith.constant dense<0.000000e+00> : vector<8x128xf32>
    %450 = tpu.matmul %433, %4, %cst_111 {dimension_numbers = #tpu.dot_dimension_numbers<[1], [0], [0], [1], [0, 0, 1, 1], [], []>} : vector<8x32xf32>, vector<32x128xf32>, vector<8x128xf32> -> vector<8x128xf32>
    %451 = arith.addf %449, %450 : vector<8x128xf32>
    %452 = vector.extract_strided_slice %451 {offsets = [0, 0], sizes = [8, 32], strides = [1, 1]} : vector<8x128xf32> to vector<8x32xf32>
    %453 = arith.negf %452 : vector<8x32xf32>
    %454 = math.exp %453 : vector<8x32xf32>
    %cst_112 = arith.constant 1.000000e+00 : f32
    %455 = vector.broadcast %cst_112 : f32 to vector<8x32xf32>
    %456 = arith.addf %455, %454 : vector<8x32xf32>
    %457 = arith.divf %455, %456 : vector<8x32xf32>
    %458 = vector.extract_strided_slice %451 {offsets = [0, 32], sizes = [8, 32], strides = [1, 1]} : vector<8x128xf32> to vector<8x32xf32>
    %459 = arith.negf %458 : vector<8x32xf32>
    %460 = math.exp %459 : vector<8x32xf32>
    %cst_113 = arith.constant 1.000000e+00 : f32
    %461 = vector.broadcast %cst_113 : f32 to vector<8x32xf32>
    %462 = arith.addf %461, %460 : vector<8x32xf32>
    %463 = arith.divf %461, %462 : vector<8x32xf32>
    %464 = vector.extract_strided_slice %451 {offsets = [0, 64], sizes = [8, 32], strides = [1, 1]} : vector<8x128xf32> to vector<8x32xf32>
    %465 = math.tanh %464 : vector<8x32xf32>
    %466 = vector.extract_strided_slice %451 {offsets = [0, 96], sizes = [8, 32], strides = [1, 1]} : vector<8x128xf32> to vector<8x32xf32>
    %467 = arith.negf %466 : vector<8x32xf32>
    %468 = math.exp %467 : vector<8x32xf32>
    %cst_114 = arith.constant 1.000000e+00 : f32
    %469 = vector.broadcast %cst_114 : f32 to vector<8x32xf32>
    %470 = arith.addf %469, %468 : vector<8x32xf32>
    %471 = arith.divf %469, %470 : vector<8x32xf32>
    %472 = arith.mulf %463, %438 : vector<8x32xf32>
    %473 = arith.mulf %457, %465 : vector<8x32xf32>
    %474 = arith.addf %472, %473 : vector<8x32xf32>
    %475 = math.tanh %474 : vector<8x32xf32>
    %476 = arith.mulf %471, %475 : vector<8x32xf32>
    %c7_i32_115 = arith.constant 7 : i32
    %477 = vector.broadcast %c7_i32_115 : i32 to vector<8x1xi32>
    %478 = arith.cmpi sgt, %0, %477 : vector<8x1xi32>
    %479 = arith.extui %478 : vector<8x1xi1> to vector<8x1xi32>
    %480 = arith.sitofp %479 : vector<8x1xi32> to vector<8x1xf32>
    %c0_i32_116 = arith.constant 0 : i32
    %481 = vector.broadcast %c0_i32_116 : i32 to vector<8x1xi32>
    %482 = arith.cmpi sgt, %0, %481 : vector<8x1xi32>
    %483 = arith.extui %482 : vector<8x1xi1> to vector<8x1xi32>
    %484 = arith.sitofp %483 : vector<8x1xi32> to vector<8x1xf32>
    %485 = vector.shape_cast %3 : vector<1x32xi1> to vector<1x32xi1>
    %486 = vector.broadcast %485 : vector<1x32xi1> to vector<8x32xi1>
    %487 = vector.shape_cast %484 : vector<8x1xf32> to vector<8x1xf32>
    %488 = vector.broadcast %487 : vector<8x1xf32> to vector<8x32xf32>
    %489 = vector.shape_cast %480 : vector<8x1xf32> to vector<8x1xf32>
    %490 = vector.broadcast %489 : vector<8x1xf32> to vector<8x32xf32>
    %491 = arith.select %486, %488, %490 : vector<8x32xi1>, vector<8x32xf32>
    %492 = arith.mulf %491, %476 : vector<8x32xf32>
    %cst_117 = arith.constant 1.000000e+00 : f32
    %493 = vector.broadcast %cst_117 : f32 to vector<8x32xf32>
    %494 = arith.subf %493, %491 : vector<8x32xf32>
    %495 = arith.mulf %494, %433 : vector<8x32xf32>
    %496 = arith.addf %492, %495 : vector<8x32xf32>
    %497 = arith.mulf %491, %474 : vector<8x32xf32>
    %cst_118 = arith.constant 1.000000e+00 : f32
    %498 = vector.broadcast %cst_118 : f32 to vector<8x32xf32>
    %499 = arith.subf %498, %491 : vector<8x32xf32>
    %500 = arith.mulf %499, %438 : vector<8x32xf32>
    %501 = arith.addf %497, %500 : vector<8x32xf32>
    %502 = arith.mulf %491, %476 : vector<8x32xf32>
    %503 = vector.extract_strided_slice %502 {offsets = [0, 0], sizes = [8, 16], strides = [1, 1]} : vector<8x32xf32> to vector<8x16xf32>
    %c7_119 = arith.constant 7 : index
    %c0_120 = arith.constant 0 : index
    %c0_121 = arith.constant 0 : index
    %504 = vector.load %arg4[%c7_119, %c0_120, %c0_121] : memref<8x8x16xf32, #tpu.memory_space<vmem>>, vector<1x8x16xf32>
    %505 = vector.shape_cast %504 : vector<1x8x16xf32> to vector<8x16xf32>
    %506 = vector.shape_cast %503 : vector<8x16xf32> to vector<1x8x16xf32>
    tpu.vector_store %arg4[%c7_119, %c0_120, %c0_121], %506 {strides = array<i32>} : memref<8x8x16xf32, #tpu.memory_space<vmem>>, vector<1x8x16xf32>,
    %507 = vector.extract_strided_slice %502 {offsets = [0, 16], sizes = [8, 16], strides = [1, 1]} : vector<8x32xf32> to vector<8x16xf32>
    %c0_122 = arith.constant 0 : index
    %c0_123 = arith.constant 0 : index
    %c0_124 = arith.constant 0 : index
    %508 = vector.load %arg5[%c0_122, %c0_123, %c0_124] : memref<8x8x16xf32, #tpu.memory_space<vmem>>, vector<1x8x16xf32>
    %509 = vector.shape_cast %508 : vector<1x8x16xf32> to vector<8x16xf32>
    %510 = vector.shape_cast %507 : vector<8x16xf32> to vector<1x8x16xf32>
    tpu.vector_store %arg5[%c0_122, %c0_123, %c0_124], %510 {strides = array<i32>} : memref<8x8x16xf32, #tpu.memory_space<vmem>>, vector<1x8x16xf32>,
    %c0_125 = arith.constant 0 : index
    %c0_126 = arith.constant 0 : index
    %511 = vector.load %arg6[%c0_125, %c0_126] : memref<8x32xf32, #tpu.memory_space<vmem>>, vector<8x32xf32>
    tpu.vector_store %arg6[%c0_125, %c0_126], %496 {strides = array<i32>} : memref<8x32xf32, #tpu.memory_space<vmem>>, vector<8x32xf32>,
    %c0_127 = arith.constant 0 : index
    %c0_128 = arith.constant 0 : index
    %512 = vector.load %arg7[%c0_127, %c0_128] : memref<8x32xf32, #tpu.memory_space<vmem>>, vector<8x32xf32>
    tpu.vector_store %arg7[%c0_127, %c0_128], %501 {strides = array<i32>} : memref<8x32xf32, #tpu.memory_space<vmem>>, vector<8x32xf32>,
    return
  }
  func.func @transform_0(%arg0: i32) -> (i32, i32) {
    %c0_i32 = arith.constant 0 : i32
    %c0_i32_0 = arith.constant 0 : i32
    %c0_i32_1 = arith.constant 0 : i32
    return %c0_i32, %c0_i32_0 : i32, i32
  }
  func.func @transform_1(%arg0: i32) -> (i32, i32, i32) {
    %c0_i32 = arith.constant 0 : i32
    %c0_i32_0 = arith.constant 0 : i32
    %c0_i32_1 = arith.constant 0 : i32
    %c0_i32_2 = arith.constant 0 : i32
    return %c0_i32, %c0_i32_0, %c0_i32_1 : i32, i32, i32
  }
  func.func @transform_2(%arg0: i32) -> (i32, i32) {
    %c0_i32 = arith.constant 0 : i32
    %c0_i32_0 = arith.constant 0 : i32
    %c0_i32_1 = arith.constant 0 : i32
    return %c0_i32, %c0_i32_0 : i32, i32
  }
  func.func @transform_3(%arg0: i32) -> (i32, i32, i32) {
    %c0_i32 = arith.constant 0 : i32
    %c0_i32_0 = arith.constant 0 : i32
    %c0_i32_1 = arith.constant 0 : i32
    %c0_i32_2 = arith.constant 0 : i32
    return %c0_i32, %c0_i32_0, %c0_i32_1 : i32, i32, i32
  }
  func.func @transform_4(%arg0: i32) -> (i32, i32, i32) {
    %c0_i32 = arith.constant 0 : i32
    %c0_i32_0 = arith.constant 0 : i32
    %c0_i32_1 = arith.constant 0 : i32
    %c0_i32_2 = arith.constant 0 : i32
    return %c0_i32, %c0_i32_0, %c0_i32_1 : i32, i32, i32
  }
  func.func @transform_5(%arg0: i32) -> (i32, i32) {
    %c0_i32 = arith.constant 0 : i32
    %c0_i32_0 = arith.constant 0 : i32
    %c0_i32_1 = arith.constant 0 : i32
    return %c0_i32, %c0_i32_0 : i32, i32
  }
  func.func @transform_6(%arg0: i32) -> (i32, i32) {
    %c0_i32 = arith.constant 0 : i32
    %c0_i32_0 = arith.constant 0 : i32
    %c0_i32_1 = arith.constant 0 : i32
    return %c0_i32, %c0_i32_0 : i32, i32
  }
}

</mosaic_0001>

<bundles_post_ra>
// kernel: rnn_encoder_forward.4
= control target key start
LH: loop header
LB: loop body
LE: loop exit
PB: predicated region body
PF: predicated region fallthrough
CT: control target
= control target key end

     0   :  { %vm28_vm0 = vcmask 130048   ;;  %s206_s1 = inlined_call_operand.vmem [shape: f32[16,128], index: 1, kind: input, shape index: {}]   ;;  %s207_s0 = inlined_call_operand.vmem [shape: f32[64,16], index: 0, kind: input, shape index: {}]   ;;  %s208_s2 = inlined_call_operand.vmem [shape: f32[1,128], index: 2, kind: input, shape index: {}]   ;;  %s209_s3 = inlined_call_operand.vmem [shape: f32[64,128], index: 3, kind: output, shape index: {}]  }
   0x1   :  { %v23_v0 = vld [vmem:[%s206_s1 + $0x8] sm:$0xff]  ;;  %v22_v1 = vld [vmem:[%s206_s1] sm:$0xff]  ;;  %v20_v3 = vld [vmem:[%s207_s0 + $0x30] sm:$0xff] }
   0x2   :  { %115 = vmatpush.msra.mxu2 %v23_v0  ;;  %116 = vmatpush.msra.mxu3 %v23_v0  ;;  %v18_v2 = vld [vmem:[%s207_s0 + $0x20] sm:$0xff]  ;;  %v16_v5 = vld [vmem:[%s207_s0 + $0x10] sm:$0xff]  ;;  %v19_v6 = vld [vmem:[%s207_s0 + $0x28] sm:$0xff] }
   0x3   :  { %67 = vmatpush.msra.mxu0 %v23_v0  ;;  %114 = vmatpush.msra.mxu1 %v23_v0  ;;  %v14_v4 = vld [vmem:[%s207_s0] sm:$0xff]  ;;  %v21_v7 = vld [vmem:[%s207_s0 + $0x38] sm:$0xff]  ;;  %v15_v8 = vld [vmem:[%s207_s0 + $0x8] sm:$0xff] }
   0x4   :  { %118 = vmatpush.msra.mxu2 %v22_v1  ;;  %119 = vmatpush.msra.mxu3 %v22_v1  ;;  %v17_v9 = vld [vmem:[%s207_s0 + $0x18] sm:$0xff]  ;;  %v120_v10 = vld [vmem:[%s208_s2] ss:$0 sm:$0xff] }
   0x5   :  { %110 = vmatmul.msk.f32.vlgmr.msra.gmra.mxu2 %vm28_vm0, %v18_v2  ;;  %112 = vmatmul.msk.f32.vlgmr.msra.gmra.mxu3 %vm28_vm0, %v20_v3 }
   0x6   :  { %68 = vmatpush.msra.mxu0 %v22_v1  ;;  %117 = vmatpush.msra.mxu1 %v22_v1 }
   0x7   :  { %106 = vmatmul.msk.f32.vlgmr.msra.gmra.mxu0 %vm28_vm0, %v14_v4  ;;  %108 = vmatmul.msk.f32.vlgmr.msra.gmra.mxu1 %vm28_vm0, %v16_v5 }
   0xd   :  { %111 = vmatmul.msk.f32.gmra.mxu2 %vm28_vm0, %v19_v6  ;;  %113 = vmatmul.msk.f32.gmra.mxu3 %vm28_vm0, %v21_v7 }
   0xf   :  { %107 = vmatmul.msk.f32.gmra.mxu0 %vm28_vm0, %v15_v8  ;;  %109 = vmatmul.msk.f32.gmra.mxu1 %vm28_vm0, %v17_v9 }
  0x84   :  { %v70_v11 = vpop.f32.mrf.mxu0  ;;  %v76_v12 = vpop.f32.mrf.mxu1 }
  0x85   :  { %v71_v13 = vadd.f32 %v120_v10, %v70_v11  ;;  %v77_v14 = vadd.f32 %v120_v10, %v76_v12 }
  0x87   :  { %94 = vst [vmem:[%s209_s3] sm:$0xff] %v71_v13 }
  0x88   :  { %96 = vst [vmem:[%s209_s3 + $0x10] sm:$0xff] %v77_v14  ;;  %v82_v15 = vpop.f32.mrf.mxu2  ;;  %v88_v16 = vpop.f32.mrf.mxu3 }
  0x89   :  { %v83_v17 = vadd.f32 %v120_v10, %v82_v15  ;;  %v89_v18 = vadd.f32 %v120_v10, %v88_v16 }
  0x8b   :  { %98 = vst [vmem:[%s209_s3 + $0x20] sm:$0xff] %v83_v17 }
  0x8c   :  { %100 = vst [vmem:[%s209_s3 + $0x30] sm:$0xff] %v89_v18  ;;  %v73_v19 = vpop.f32.mrf.mxu0  ;;  %v79_v20 = vpop.f32.mrf.mxu1 }
  0x8d   :  { %v74_v21 = vadd.f32 %v120_v10, %v73_v19  ;;  %v80_v22 = vadd.f32 %v120_v10, %v79_v20 }
  0x8f   :  { %95 = vst [vmem:[%s209_s3 + $0x8] sm:$0xff] %v74_v21 }
  0x90   :  { %97 = vst [vmem:[%s209_s3 + $0x18] sm:$0xff] %v80_v22  ;;  %v85_v23 = vpop.f32.mrf.mxu2  ;;  %v91_v24 = vpop.f32.mrf.mxu3 }
  0x91   :  { %v86_v25 = vadd.f32 %v120_v10, %v85_v23  ;;  %v92_v26 = vadd.f32 %v120_v10, %v91_v24 }
  0x93   :  { %99 = vst [vmem:[%s209_s3 + $0x28] sm:$0xff] %v86_v25 }
  0x94   :  { %101 = vst [vmem:[%s209_s3 + $0x38] sm:$0xff] %v92_v26 }

// kernel: rnn_encoder_forward.6
= control target key start
LH: loop header
LB: loop body
LE: loop exit
PB: predicated region body
PF: predicated region fallthrough
CT: control target
= control target key end

     0   :  { %vm30_vm0 = vcmask 261120   ;;  %s220_s1 = inlined_call_operand.vmem [shape: f32[32,128], index: 1, kind: input, shape index: {}]   ;;  %s221_s0 = inlined_call_operand.vmem [shape: f32[64,32], index: 0, kind: input, shape index: {}]   ;;  %s222_s2 = inlined_call_operand.vmem [shape: f32[1,128], index: 2, kind: input, shape index: {}]   ;;  %s223_s3 = inlined_call_operand.vmem [shape: f32[64,128], index: 3, kind: output, shape index: {}]  }
   0x1   :  { %v25_v0 = vld [vmem:[%s220_s1 + $0x18] sm:$0xff]  ;;  %v24_v1 = vld [vmem:[%s220_s1 + $0x10] sm:$0xff]  ;;  %v23_v2 = vld [vmem:[%s220_s1 + $0x8] sm:$0xff] }
   0x2   :  { %117 = vmatpush.msra.mxu2 %v25_v0  ;;  %118 = vmatpush.msra.mxu3 %v25_v0  ;;  %v22_v3 = vld [vmem:[%s220_s1] sm:$0xff]  ;;  %v20_v5 = vld [vmem:[%s221_s0 + $0x30] sm:$0xff]  ;;  %v19_v8 = vld [vmem:[%s221_s0 + $0x28] sm:$0xff] }
   0x3   :  { %67 = vmatpush.msra.mxu0 %v25_v0  ;;  %116 = vmatpush.msra.mxu1 %v25_v0  ;;  %v18_v4 = vld [vmem:[%s221_s0 + $0x20] sm:$0xff]  ;;  %v16_v7 = vld [vmem:[%s221_s0 + $0x10] sm:$0xff]  ;;  %v21_v9 = vld [vmem:[%s221_s0 + $0x38] sm:$0xff] }
   0x4   :  { %120 = vmatpush.msra.mxu2 %v24_v1  ;;  %121 = vmatpush.msra.mxu3 %v24_v1  ;;  %v14_v6 = vld [vmem:[%s221_s0] sm:$0xff]  ;;  %v15_v10 = vld [vmem:[%s221_s0 + $0x8] sm:$0xff]  ;;  %v17_v11 = vld [vmem:[%s221_s0 + $0x18] sm:$0xff] }
   0x5   :  { %68 = vmatpush.msra.mxu0 %v24_v1  ;;  %119 = vmatpush.msra.mxu1 %v24_v1  ;;  %v128_v12 = vld [vmem:[%s222_s2] ss:$0 sm:$0xff] }
   0x6   :  { %123 = vmatpush.msra.mxu2 %v23_v2  ;;  %124 = vmatpush.msra.mxu3 %v23_v2 }
   0x7   :  { %69 = vmatpush.msra.mxu0 %v23_v2  ;;  %122 = vmatpush.msra.mxu1 %v23_v2 }
   0x8   :  { %126 = vmatpush.msra.mxu2 %v22_v3  ;;  %127 = vmatpush.msra.mxu3 %v22_v3 }
   0x9   :  { %112 = vmatmul.msk.f32.vlgmr.msra.gmra.mxu2 %vm30_vm0, %v18_v4  ;;  %114 = vmatmul.msk.f32.vlgmr.msra.gmra.mxu3 %vm30_vm0, %v20_v5 }
   0xa   :  { %70 = vmatpush.msra.mxu0 %v22_v3  ;;  %125 = vmatpush.msra.mxu1 %v22_v3 }
   0xb   :  { %108 = vmatmul.msk.f32.vlgmr.msra.gmra.mxu0 %vm30_vm0, %v14_v6  ;;  %110 = vmatmul.msk.f32.vlgmr.msra.gmra.mxu1 %vm30_vm0, %v16_v7 }
  0x11   :  { %113 = vmatmul.msk.f32.gmra.mxu2 %vm30_vm0, %v19_v8  ;;  %115 = vmatmul.msk.f32.gmra.mxu3 %vm30_vm0, %v21_v9 }
  0x13   :  { %109 = vmatmul.msk.f32.gmra.mxu0 %vm30_vm0, %v15_v10  ;;  %111 = vmatmul.msk.f32.gmra.mxu1 %vm30_vm0, %v17_v11 }
  0x88   :  { %v72_v13 = vpop.f32.mrf.mxu0  ;;  %v78_v14 = vpop.f32.mrf.mxu1 }
  0x89   :  { %v73_v15 = vadd.f32 %v128_v12, %v72_v13  ;;  %v79_v16 = vadd.f32 %v128_v12, %v78_v14 }
  0x8b   :  { %96 = vst [vmem:[%s223_s3] sm:$0xff] %v73_v15 }
  0x8c   :  { %98 = vst [vmem:[%s223_s3 + $0x10] sm:$0xff] %v79_v16  ;;  %v84_v17 = vpop.f32.mrf.mxu2  ;;  %v90_v18 = vpop.f32.mrf.mxu3 }
  0x8d   :  { %v85_v19 = vadd.f32 %v128_v12, %v84_v17  ;;  %v91_v20 = vadd.f32 %v128_v12, %v90_v18 }
  0x8f   :  { %100 = vst [vmem:[%s223_s3 + $0x20] sm:$0xff] %v85_v19 }
  0x90   :  { %102 = vst [vmem:[%s223_s3 + $0x30] sm:$0xff] %v91_v20  ;;  %v75_v21 = vpop.f32.mrf.mxu0  ;;  %v81_v22 = vpop.f32.mrf.mxu1 }
  0x91   :  { %v76_v23 = vadd.f32 %v128_v12, %v75_v21  ;;  %v82_v24 = vadd.f32 %v128_v12, %v81_v22 }
  0x93   :  { %97 = vst [vmem:[%s223_s3 + $0x8] sm:$0xff] %v76_v23 }
  0x94   :  { %99 = vst [vmem:[%s223_s3 + $0x18] sm:$0xff] %v82_v24  ;;  %v87_v25 = vpop.f32.mrf.mxu2  ;;  %v93_v26 = vpop.f32.mrf.mxu3 }
  0x95   :  { %v88_v27 = vadd.f32 %v128_v12, %v87_v25  ;;  %v94_v28 = vadd.f32 %v128_v12, %v93_v26 }
  0x97   :  { %101 = vst [vmem:[%s223_s3 + $0x28] sm:$0xff] %v88_v27 }
  0x98   :  { %103 = vst [vmem:[%s223_s3 + $0x38] sm:$0xff] %v94_v28 }

// kernel: rnn_encoder_forward.5
= control target key start
LH: loop header
LB: loop body
LE: loop exit
PB: predicated region body
PF: predicated region fallthrough
CT: control target
= control target key end

     0   :  { %v969_v4 = vmov 0.0   ;;  %s970_s30 = smov 64   ;;  %s971_s7 = smov 32   ;;  %v972_v24 = vmov 0   ;;  %v19_v35 = vlaneseq  ;;  %vm122_vm7 = vcmask 130048   ;;  %s1293_s2 = inlined_call_operand.vmem [shape: f32[32,128], index: 2, kind: input, shape index: {}]   ;;  %s1294_s1 = inlined_call_operand.vmem [shape: f32[8,8,128], index: 1, kind: input, shape index: {}]   ;;  %s1295_s0 = inlined_call_operand.vmem [shape: s32[8,1], index: 0, kind: input, shape index: {}]   ;;  %s1296_s3 = inlined_call_operand.vmem [shape: f32[8,8,16], index: 3, kind: output, shape index: {0}]   ;;  %s1297_s6 = inlined_call_operand.vmem [shape: f32[8,32], index: 6, kind: output, shape index: {3}]   ;;  %s1298_s4 = inlined_call_operand.vmem [shape: f32[8,8,16], index: 4, kind: output, shape index: {1}]   ;;  %s1299_s5 = inlined_call_operand.vmem [shape: f32[8,32], index: 5, kind: output, shape index: {2}]  }
   0x1   :  { %v25_v0 = vld [vmem:[%s1293_s2 + $0x18] sm:$0xff]  ;;  %v24_v1 = vld [vmem:[%s1293_s2 + $0x10] sm:$0xff]  ;;  %v23_v2 = vld [vmem:[%s1293_s2 + $0x8] sm:$0xff]  ;;  %882 = vset.pattern.permute.xlu1 %v972_v24  ;;  %893 = vset.pattern.permute.xlu2 %v972_v24  ;;  %s973_s10 = smov 96   ;;  %vm27_vm8 = vcmask 261120  }
   0x2   :  { %43 = vmatpush.msra.mxu0 %v25_v0  ;;  %147 = vmatpush.msra.mxu1 %v25_v0  ;;  %v22_v3 = vld [vmem:[%s1293_s2] sm:$0xff]  ;;  %v1040_v37 = vand.u32 127, %v19_v35  ;;  %v836_v54 = vld [vmem:[%s1294_s1 + $0x8] sm:$0xff] }
   0x3   :  { %254 = vmatpush.msra.mxu2 %v25_v0  ;;  %361 = vmatpush.msra.mxu3 %v25_v0  ;;  %v26_v5 = vld [vmem:[%s1294_s1] sm:$0xff] }
   0x4   :  { %44 = vmatpush.msra.mxu0 %v24_v1  ;;  %148 = vmatpush.msra.mxu1 %v24_v1  ;;  %v1031_v28 = vld [vmem:[%s1295_s0] sm:$0xff]  ;;  %vm21_vm6 = vcmp.ge.s32.totalorder %v1040_v37, 16  ;;  %v867_v37 = vld [vmem:[%s1294_s1 + $0x30] sm:$0xff] }
   0x5   :  { %255 = vmatpush.msra.mxu2 %v24_v1  ;;  %362 = vmatpush.msra.mxu3 %v24_v1  ;;  %vm89_vm4 = vcmp.gt.s32.totalorder %v1031_v28, 0  ;;  %vm92_vm5 = vcmp.gt.s32.totalorder %v1031_v28, 7  ;;  %vm197_vm9 = vcmp.gt.s32.totalorder %v1031_v28, 1  ;;  %vm200_vm10 = vcmp.gt.s32.totalorder %v1031_v28, 6 }
   0x6   :  { %45 = vmatpush.msra.mxu0 %v23_v2  ;;  %149 = vmatpush.msra.mxu1 %v23_v2  ;;  %v833_v30 = vsel %vm89_vm4, 1.0, %v969_v4  ;;  %v834_v31 = vsel %vm92_vm5, 1.0, %v969_v4  ;;  %v839_v50 = vsel %vm197_vm9, 1.0, %v969_v4  ;;  %v840_v51 = vsel %vm200_vm10, 1.0, %v969_v4 }
   0x7   :  { %256 = vmatpush.msra.mxu2 %v23_v2  ;;  %363 = vmatpush.msra.mxu3 %v23_v2  ;;  %v883_v32 = vpack.i.bf16 %v833_v30, %v834_v31  ;;  %v888_v52 = vpack.i.bf16 %v839_v50, %v840_v51  ;;  %vm304_vm15 = vcmp.gt.s32.totalorder %v1031_v28, 2  ;;  %vm411_vm5 = vcmp.gt.s32.totalorder %v1031_v28, 3 }
   0x8   :  { %46 = vmatpush.msra.mxu0 %v22_v3  ;;  %150 = vmatpush.msra.mxu1 %v22_v3  ;;  %vm414_vm9 = vcmp.gt.s32.totalorder %v1031_v28, 4 }
   0x9   :  { %47 = vmatmul.f32.vlgmr.msra.gmra.mxu0 %v969_v4  ;;  %257 = vmatpush.msra.mxu2 %v22_v3 }
   0xa   :  { %364 = vmatpush.msra.mxu3 %v22_v3  ;;  %468 = vmatpush.msrb.mxu0 %v25_v0 }
   0xb   :  { %559 = vmatpush.msrb.mxu1 %v25_v0  ;;  %650 = vmatpush.msrb.mxu2 %v25_v0 }
   0xc   :  { %469 = vmatpush.msrb.mxu0 %v24_v1  ;;  %741 = vmatpush.msrb.mxu3 %v25_v0 }
   0xd   :  { %560 = vmatpush.msrb.mxu1 %v24_v1  ;;  %651 = vmatpush.msrb.mxu2 %v24_v1 }
   0xe   :  { %470 = vmatpush.msrb.mxu0 %v23_v2  ;;  %742 = vmatpush.msrb.mxu3 %v24_v1 }
   0xf   :  { %561 = vmatpush.msrb.mxu1 %v23_v2  ;;  %652 = vmatpush.msrb.mxu2 %v23_v2 }
  0x10   :  { %471 = vmatpush.msrb.mxu0 %v22_v3  ;;  %743 = vmatpush.msrb.mxu3 %v23_v2 }
  0x11   :  { %562 = vmatpush.msrb.mxu1 %v22_v3  ;;  %653 = vmatpush.msrb.mxu2 %v22_v3 }
  0x12   :  { %744 = vmatpush.msrb.mxu3 %v22_v3  ;;  %899 = vset.pattern.permute.xlu0 %v972_v24 }
  0x86   :  { %v48_v6 = vpop.f32.mrf.mxu0 }
  0x87   :  { %v51_v7 = vadd.f32 %v48_v6, %v26_v5 }
  0x89   :  { %905 = vtanh.f32 %v51_v7  ;;  %v832_v9 = vmul.f32 -1.442695, %v51_v7 }
  0x8b   :  { %907 = vpow2.f32 %v832_v9 }
  0x8f   :  { %v906_v8 = vpop.eup %905 }
  0x90   :  { %74 = vrot.lane.b32.xlu0 %v906_v8, %s970_s30 }
  0x91   :  { %v908_v10 = vpop.eup %907 }
  0x92   :  { %v55_v11 = vadd.f32 1.0, %v908_v10 }
  0x94   :  { %909 = vrcp.f32 %v55_v11  ;;  %v67_v17 = vand.u32 2147483648, %v55_v11  ;;  %vm61_vm1 = vweird.f32 %v55_v11  ;;  %v65_v18 = vand.u32 2147483647, %v55_v11 }
  0x96   :  { %v68_v20 = vor.u32 1.1754944e-38, %v67_v17  ;;  %vm66_vm3 = vcmp.eq.f32.partialorder %v65_v18, 8.507059e+37 }
  0x9a   :  { %v910_v12 = vpop.eup %909 }
  0x9b   :  { %v57_v13 = vmul.f32 %v910_v12, %v55_v11  ;;  %vm62_vm0 = vweird.f32 %v910_v12 }
  0x9c   :  { %vm63_vm2 = vmor %vm61_vm1, %vm62_vm0  ;;  %vm307_vm0 = vcmp.gt.s32.totalorder %v1031_v28, 5 }
  0x9d   :  { %v58_v14 = vsub.f32 1.0, %v57_v13 }
  0x9f   :  { %v59_v15 = vmul.f32 %v910_v12, %v58_v14 }
  0xa1   :  { %v60_v16 = vadd.f32 %v910_v12, %v59_v15 }
  0xa3   :  { %v64_v19 = vsel %vm63_vm2, %v910_v12, %v60_v16 }
  0xa4   :  { %v69_v22 = vsel %vm66_vm3, %v68_v20, %v64_v19 }
  0xa5   :  { %v72_v25 = vmul.f32 0.0, %v69_v22 }
 0x102   :  { %v75_v21 = vpop.permute.xlu0 %74 }
 0x103   :  { %v77_v23 = vmul.f32 %v75_v21, %v69_v22 }
 0x105   :  { %79 = vrot.lane.b32.xlu0 %v77_v23, %s971_s7 }
 0x177   :  { %v80_v26 = vpop.permute.xlu0 %79 }
 0x178   :  { %v82_v27 = vadd.f32 %v80_v26, %v72_v25  ;;  %v846_v26 = vsel %vm304_vm15, 1.0, %v969_v4 }
 0x17a   :  { %911 = vtanh.f32 %v82_v27 }
 0x180   :  { %v912_v29 = vpop.eup %911 }
 0x181   :  { %85 = vrot.lane.b32.xlu1 %v912_v29, %s970_s30 }
 0x189   :  { %884 = vperm.xlu1 %882, %v883_v32  }
 0x1f3   :  { %v86_v33 = vpop.permute.xlu1 %85 }
 0x1f4   :  { %v88_v34 = vmul.f32 %v86_v33, %v69_v22 }
 0x1f6   :  { %109 = vrot.lane.b32.xlu2 %v88_v34, %s971_s7 }
 0x1fb   :  { %v885_v36 = vpop.permute.xlu1 %884 }
 0x1fc   :  { %v887_v38 = vunpack.i.h.bf16 %v885_v36  ;;  %v886_v39 = vunpack.i.l.bf16 %v885_v36 }
 0x1fe   :  { %117 = vrot.lane.b32.xlu2 %v82_v27, %s973_s10  ;;  %v1045_v40 = vsel %vm21_vm6, %v887_v38, %v886_v39  ;;  %v107_v41 = vsel %vm21_vm6, %v886_v39, %v887_v38  ;;  %v847_v27 = vsel %vm307_vm0, 1.0, %v969_v4 }
 0x1ff   :  { %v113_v42 = vsub.f32 1.0, %v107_v41  ;;  %v894_v29 = vpack.i.bf16 %v846_v26, %v847_v27 }
 0x201   :  { %v114_v43 = vmul.f32 0.0, %v113_v42 }
 0x250   :  { %v110_v44 = vpop.permute.xlu2 %109 }
 0x251   :  { %v1049_v45 = vmul.f32 %v110_v44, %v107_v41 }
 0x253   :  { %123 = vst.msk [vmem:[%s1296_s3] sm:$0xff] %vm122_vm7, %v1049_v45  ;;  %v1057_v46 = vadd.f32 %v114_v43, %v1049_v45 }
 0x255   :  { %837 = vmatmul.msk.f32.vlgmr.msra.gmra.mxu1 %vm27_vm8, %v1057_v46 }
 0x258   :  { %v118_v47 = vpop.permute.xlu2 %117 }
 0x259   :  { %v120_v48 = vmul.f32 %v118_v47, %v107_v41 }
 0x25b   :  { %v121_v49 = vadd.f32 %v120_v48, %v114_v43  ;;  %v843_v43 = vld [vmem:[%s1294_s1 + $0x10] sm:$0xff] }
 0x25d   :  { %177 = vrot.lane.b32.xlu1 %v121_v49, %s971_s7 }
 0x265   :  { %889 = vperm.xlu1 %882, %v888_v52  }
 0x2cf   :  { %v178_v53 = vpop.permute.xlu1 %177 }
 0x2d2   :  { %v152_v55 = vpop.f32.mrf.mxu1 }
 0x2d3   :  { %v155_v56 = vadd.f32 %v836_v54, %v152_v55 }
 0x2d5   :  { %913 = vtanh.f32 %v155_v56  ;;  %v838_v62 = vmul.f32 -1.442695, %v155_v56 }
 0x2d7   :  { %v890_v57 = vpop.permute.xlu1 %889  ;;  %915 = vpow2.f32 %v838_v62 }
 0x2d8   :  { %v892_v58 = vunpack.i.h.bf16 %v890_v57  ;;  %v891_v59 = vunpack.i.l.bf16 %v890_v57 }
 0x2da   :  { %v1071_v60 = vsel %vm21_vm6, %v892_v58, %v891_v59  ;;  %v213_v20 = vsel %vm21_vm6, %v891_v59, %v892_v58 }
 0x2db   :  { %v914_v61 = vpop.eup %913  ;;  %v219_v21 = vsub.f32 1.0, %v213_v20 }
 0x2dc   :  { %182 = vrot.lane.b32.xlu0 %v914_v61, %s970_s30 }
 0x2dd   :  { %v916_v63 = vpop.eup %915  ;;  %v227_v23 = vmul.f32 %v219_v21, %v121_v49  ;;  %v220_v32 = vmul.f32 %v219_v21, %v1057_v46 }
 0x2de   :  { %v159_v0 = vadd.f32 1.0, %v916_v63 }
 0x2e0   :  { %917 = vrcp.f32 %v159_v0  ;;  %v171_v7 = vand.u32 2147483648, %v159_v0  ;;  %vm165_vm12 = vweird.f32 %v159_v0  ;;  %v169_v8 = vand.u32 2147483647, %v159_v0 }
 0x2e2   :  { %v172_v10 = vor.u32 1.1754944e-38, %v171_v7  ;;  %vm170_vm14 = vcmp.eq.f32.partialorder %v169_v8, 8.507059e+37 }
 0x2e6   :  { %v918_v1 = vpop.eup %917 }
 0x2e7   :  { %v161_v2 = vmul.f32 %v918_v1, %v159_v0  ;;  %vm166_vm11 = vweird.f32 %v918_v1 }
 0x2e8   :  { %vm167_vm13 = vmor %vm165_vm12, %vm166_vm11 }
 0x2e9   :  { %v162_v3 = vsub.f32 1.0, %v161_v2 }
 0x2eb   :  { %v163_v5 = vmul.f32 %v918_v1, %v162_v3 }
 0x2ed   :  { %v164_v6 = vadd.f32 %v918_v1, %v163_v5 }
 0x2ef   :  { %v168_v9 = vsel %vm167_vm13, %v918_v1, %v164_v6 }
 0x2f0   :  { %v173_v12 = vsel %vm170_vm14, %v172_v10, %v168_v9 }
 0x2f1   :  { %v180_v14 = vmul.f32 %v178_v53, %v173_v12 }
 0x34e   :  { %v183_v11 = vpop.permute.xlu0 %182 }
 0x34f   :  { %v185_v13 = vmul.f32 %v183_v11, %v173_v12  ;;  %v853_v11 = vsel %vm411_vm5, 1.0, %v969_v4 }
 0x351   :  { %187 = vrot.lane.b32.xlu2 %v185_v13, %s971_s7 }
 0x3ab   :  { %v188_v15 = vpop.permute.xlu2 %187 }
 0x3ac   :  { %v190_v16 = vadd.f32 %v188_v15, %v180_v14 }
 0x3ae   :  { %919 = vtanh.f32 %v190_v16 }
 0x3b4   :  { %v920_v17 = vpop.eup %919 }
 0x3b5   :  { %193 = vrot.lane.b32.xlu0 %v920_v17, %s970_s30 }
 0x3bd   :  { %223 = vrot.lane.b32.xlu0 %v190_v16, %s973_s10 }
 0x427   :  { %v194_v18 = vpop.permute.xlu0 %193 }
 0x428   :  { %v196_v19 = vmul.f32 %v194_v18, %v173_v12  ;;  %v854_v12 = vsel %vm414_vm9, 1.0, %v969_v4 }
 0x429   :  { %v900_v13 = vpack.i.bf16 %v853_v11, %v854_v12 }
 0x42a   :  { %215 = vrot.lane.b32.xlu2 %v196_v19, %s971_s7 }
 0x42f   :  { %v224_v22 = vpop.permute.xlu0 %223 }
 0x430   :  { %v226_v24 = vmul.f32 %v224_v22, %v213_v20  ;;  %v850_v22 = vld [vmem:[%s1294_s1 + $0x18] sm:$0xff] }
 0x432   :  { %v228_v25 = vadd.f32 %v227_v23, %v226_v24 }
 0x434   :  { %284 = vrot.lane.b32.xlu2 %v228_v25, %s971_s7 }
 0x43c   :  { %895 = vperm.xlu2 %893, %v894_v29  }
 0x484   :  { %v216_v30 = vpop.permute.xlu2 %215 }
 0x485   :  { %v1085_v31 = vmul.f32 %v216_v30, %v213_v20 }
 0x487   :  { %841 = vst.msk [vmem:[%s1296_s3 + $0x8] sm:$0xff] %vm122_vm7, %v1085_v31  ;;  %v221_v33 = vadd.f32 %v220_v32, %v1085_v31 }
 0x489   :  { %844 = vmatmul.msk.f32.vlgmr.msra.gmra.mxu2 %vm27_vm8, %v221_v33 }
 0x48e   :  { %v285_v34 = vpop.permute.xlu2 %284 }
 0x496   :  { %v1095_v35 = vpop.permute.xlu2 %895 }
 0x497   :  { %v898_v36 = vunpack.i.h.bf16 %v1095_v35  ;;  %v897_v38 = vunpack.i.l.bf16 %v1095_v35 }
 0x499   :  { %v320_v39 = vsel %vm21_vm6, %v897_v38, %v898_v36 }
 0x49a   :  { %v326_v41 = vsub.f32 1.0, %v320_v39 }
 0x49c   :  { %v327_v42 = vmul.f32 %v326_v41, %v221_v33  ;;  %v334_v8 = vmul.f32 %v326_v41, %v228_v25 }
 0x50c   :  { %v259_v44 = vpop.f32.mrf.mxu2 }
 0x50d   :  { %v262_v46 = vadd.f32 %v843_v43, %v259_v44 }
 0x50f   :  { %921 = vtanh.f32 %v262_v46  ;;  %v845_v48 = vmul.f32 -1.442695, %v262_v46 }
 0x511   :  { %923 = vpow2.f32 %v845_v48 }
 0x515   :  { %v922_v47 = vpop.eup %921 }
 0x516   :  { %289 = vrot.lane.b32.xlu1 %v922_v47, %s970_s30 }
 0x517   :  { %v924_v49 = vpop.eup %923 }
 0x518   :  { %v266_v50 = vadd.f32 1.0, %v924_v49 }
 0x51a   :  { %925 = vrcp.f32 %v266_v50  ;;  %v278_v56 = vand.u32 2147483648, %v266_v50  ;;  %vm272_vm2 = vweird.f32 %v266_v50  ;;  %v276_v57 = vand.u32 2147483647, %v266_v50 }
 0x51c   :  { %v279_v59 = vor.u32 1.1754944e-38, %v278_v56  ;;  %vm277_vm4 = vcmp.eq.f32.partialorder %v276_v57, 8.507059e+37 }
 0x520   :  { %v926_v51 = vpop.eup %925 }
 0x521   :  { %v268_v52 = vmul.f32 %v926_v51, %v266_v50  ;;  %vm273_vm1 = vweird.f32 %v926_v51 }
 0x522   :  { %vm274_vm3 = vmor %vm272_vm2, %vm273_vm1 }
 0x523   :  { %v269_v53 = vsub.f32 1.0, %v268_v52 }
 0x525   :  { %v270_v54 = vmul.f32 %v926_v51, %v269_v53 }
 0x527   :  { %v271_v55 = vadd.f32 %v926_v51, %v270_v54 }
 0x529   :  { %v275_v58 = vsel %vm274_vm3, %v926_v51, %v271_v55 }
 0x52a   :  { %v280_v62 = vsel %vm277_vm4, %v279_v59, %v275_v58 }
 0x52b   :  { %v287_v0 = vmul.f32 %v285_v34, %v280_v62 }
 0x588   :  { %v290_v61 = vpop.permute.xlu1 %289 }
 0x589   :  { %v292_v63 = vmul.f32 %v290_v61, %v280_v62 }
 0x58b   :  { %294 = vrot.lane.b32.xlu0 %v292_v63, %s971_s7  ;;  %v857_v63 = vld [vmem:[%s1294_s1 + $0x20] sm:$0xff] }
 0x5fd   :  { %v295_v1 = vpop.permute.xlu0 %294 }
 0x5fe   :  { %v297_v2 = vadd.f32 %v295_v1, %v287_v0 }
 0x600   :  { %927 = vtanh.f32 %v297_v2 }
 0x606   :  { %v928_v3 = vpop.eup %927 }
 0x607   :  { %300 = vrot.lane.b32.xlu1 %v928_v3, %s970_s30 }
 0x60f   :  { %330 = vrot.lane.b32.xlu1 %v297_v2, %s973_s10 }
 0x679   :  { %v301_v5 = vpop.permute.xlu1 %300 }
 0x67a   :  { %v303_v6 = vmul.f32 %v301_v5, %v280_v62 }
 0x67c   :  { %322 = vrot.lane.b32.xlu0 %v303_v6, %s971_s7 }
 0x681   :  { %v331_v7 = vpop.permute.xlu1 %330 }
 0x682   :  { %v333_v9 = vmul.f32 %v331_v7, %v320_v39 }
 0x684   :  { %v335_v10 = vadd.f32 %v334_v8, %v333_v9 }
 0x686   :  { %391 = vrot.lane.b32.xlu0 %v335_v10, %s971_s7 }
 0x68e   :  { %901 = vperm.xlu0 %899, %v900_v13  }
 0x6ee   :  { %v323_v14 = vpop.permute.xlu0 %322 }
 0x6ef   :  { %v1118_v15 = vmul.f32 %v323_v14, %v320_v39 }
 0x6f1   :  { %848 = vst.msk [vmem:[%s1296_s3 + $0x10] sm:$0xff] %vm122_vm7, %v1118_v15  ;;  %v328_v16 = vadd.f32 %v327_v42, %v1118_v15 }
 0x6f3   :  { %851 = vmatmul.msk.f32.vlgmr.msra.gmra.mxu3 %vm27_vm8, %v328_v16 }
 0x6f8   :  { %v392_v28 = vpop.permute.xlu0 %391 }
 0x700   :  { %v1127_v17 = vpop.permute.xlu0 %901 }
 0x701   :  { %v904_v4 = vunpack.i.h.bf16 %v1127_v17  ;;  %v903_v18 = vunpack.i.l.bf16 %v1127_v17 }
 0x703   :  { %v427_v19 = vsel %vm21_vm6, %v903_v18, %v904_v4 }
 0x704   :  { %v433_v20 = vsub.f32 1.0, %v427_v19 }
 0x706   :  { %v434_v21 = vmul.f32 %v433_v20, %v328_v16  ;;  %v441_v56 = vmul.f32 %v433_v20, %v335_v10 }
 0x776   :  { %v366_v23 = vpop.f32.mrf.mxu3 }
 0x777   :  { %v369_v24 = vadd.f32 %v850_v22, %v366_v23 }
 0x779   :  { %929 = vtanh.f32 %v369_v24  ;;  %v852_v26 = vmul.f32 -1.442695, %v369_v24 }
 0x77b   :  { %931 = vpow2.f32 %v852_v26  ;;  %v518_v26 = vsel %vm21_vm6, %v904_v4, %v903_v18  ;;  %v862_v4 = vld [vmem:[%s1294_s1 + $0x28] sm:$0xff] }
 0x77f   :  { %v930_v25 = vpop.eup %929 }
 0x780   :  { %396 = vrot.lane.b32.xlu2 %v930_v25, %s970_s30 }
 0x781   :  { %v932_v27 = vpop.eup %931 }
 0x782   :  { %v373_v29 = vadd.f32 1.0, %v932_v27 }
 0x784   :  { %933 = vrcp.f32 %v373_v29  ;;  %v385_v41 = vand.u32 2147483648, %v373_v29  ;;  %vm379_vm11 = vweird.f32 %v373_v29  ;;  %v383_v42 = vand.u32 2147483647, %v373_v29 }
 0x786   :  { %v386_v44 = vor.u32 1.1754944e-38, %v385_v41  ;;  %vm384_vm13 = vcmp.eq.f32.partialorder %v383_v42, 8.507059e+37 }
 0x78a   :  { %v934_v30 = vpop.eup %933 }
 0x78b   :  { %v375_v32 = vmul.f32 %v934_v30, %v373_v29  ;;  %vm380_vm10 = vweird.f32 %v934_v30 }
 0x78c   :  { %vm381_vm12 = vmor %vm379_vm11, %vm380_vm10 }
 0x78d   :  { %v376_v33 = vsub.f32 1.0, %v375_v32  ;;  %v524_v32 = vsub.f32 1.0, %v518_v26 }
 0x78f   :  { %v377_v34 = vmul.f32 %v934_v30, %v376_v33 }
 0x791   :  { %v378_v39 = vadd.f32 %v934_v30, %v377_v34 }
 0x793   :  { %v382_v43 = vsel %vm381_vm12, %v934_v30, %v378_v39 }
 0x794   :  { %v387_v47 = vsel %vm384_vm13, %v386_v44, %v382_v43 }
 0x795   :  { %v394_v49 = vmul.f32 %v392_v28, %v387_v47 }
 0x7da   :  { %v397_v46 = vpop.permute.xlu2 %396 }
 0x7db   :  { %v399_v48 = vmul.f32 %v397_v46, %v387_v47 }
 0x7dd   :  { %401 = vrot.lane.b32.xlu1 %v399_v48, %s971_s7 }
 0x84f   :  { %v402_v50 = vpop.permute.xlu1 %401 }
 0x850   :  { %v404_v51 = vadd.f32 %v402_v50, %v394_v49 }
 0x852   :  { %935 = vtanh.f32 %v404_v51 }
 0x858   :  { %v936_v52 = vpop.eup %935 }
 0x859   :  { %407 = vrot.lane.b32.xlu2 %v936_v52, %s970_s30 }
 0x861   :  { %437 = vrot.lane.b32.xlu2 %v404_v51, %s973_s10 }
 0x8b3   :  { %v408_v53 = vpop.permute.xlu2 %407 }
 0x8b4   :  { %v410_v54 = vmul.f32 %v408_v53, %v387_v47 }
 0x8b6   :  { %429 = vrot.lane.b32.xlu1 %v410_v54, %s971_s7 }
 0x8bb   :  { %v438_v55 = vpop.permute.xlu2 %437 }
 0x8bc   :  { %v440_v57 = vmul.f32 %v438_v55, %v427_v19 }
 0x8be   :  { %v442_v58 = vadd.f32 %v441_v56, %v440_v57 }
 0x8c0   :  { %498 = vrot.lane.b32.xlu2 %v442_v58, %s971_s7  ;;  %v532_v34 = vmul.f32 %v524_v32, %v442_v58 }
 0x928   :  { %v430_v59 = vpop.permute.xlu1 %429 }
 0x929   :  { %v1146_v61 = vmul.f32 %v430_v59, %v427_v19 }
 0x92b   :  { %v435_v62 = vadd.f32 %v434_v21, %v1146_v61  ;;  %855 = vst.msk [vmem:[%s1296_s3 + $0x18] sm:$0xff] %vm122_vm7, %v1146_v61  ;;  %v499_v21 = vpop.permute.xlu2 %498 }
 0x92d   :  { %858 = vmatmul.msk.f32.vlgmr.msrb.gmra.mxu0 %vm27_vm8, %v435_v62  ;;  %v525_v42 = vmul.f32 %v524_v32, %v435_v62 }
 0x9aa   :  { %v473_v0 = vpop.f32.mrf.mxu0 }
 0x9ab   :  { %v476_v1 = vadd.f32 %v857_v63, %v473_v0 }
 0x9ad   :  { %937 = vtanh.f32 %v476_v1  ;;  %v859_v3 = vmul.f32 -1.442695, %v476_v1 }
 0x9af   :  { %939 = vpow2.f32 %v859_v3 }
 0x9b3   :  { %v938_v2 = vpop.eup %937 }
 0x9b4   :  { %503 = vrot.lane.b32.xlu1 %v938_v2, %s970_s30 }
 0x9b5   :  { %v940_v5 = vpop.eup %939 }
 0x9b6   :  { %v480_v6 = vadd.f32 1.0, %v940_v5 }
 0x9b8   :  { %941 = vrcp.f32 %v480_v6  ;;  %v492_v12 = vand.u32 2147483648, %v480_v6  ;;  %vm486_vm15 = vweird.f32 %v480_v6  ;;  %v490_v13 = vand.u32 2147483647, %v480_v6 }
 0x9ba   :  { %v493_v16 = vor.u32 1.1754944e-38, %v492_v12  ;;  %vm491_vm1 = vcmp.eq.f32.partialorder %v490_v13, 8.507059e+37 }
 0x9be   :  { %v942_v7 = vpop.eup %941 }
 0x9bf   :  { %v482_v8 = vmul.f32 %v942_v7, %v480_v6  ;;  %vm487_vm14 = vweird.f32 %v942_v7 }
 0x9c0   :  { %vm488_vm0 = vmor %vm486_vm15, %vm487_vm14 }
 0x9c1   :  { %v483_v9 = vsub.f32 1.0, %v482_v8  ;;  %v609_v8 = vsel %vm21_vm6, %v898_v36, %v897_v38 }
 0x9c3   :  { %v484_v10 = vmul.f32 %v942_v7, %v483_v9 }
 0x9c5   :  { %v485_v11 = vadd.f32 %v942_v7, %v484_v10  ;;  %v615_v10 = vsub.f32 1.0, %v609_v8 }
 0x9c7   :  { %v489_v14 = vsel %vm488_vm0, %v942_v7, %v485_v11 }
 0x9c8   :  { %v494_v19 = vsel %vm491_vm1, %v493_v16, %v489_v14 }
 0x9c9   :  { %v501_v22 = vmul.f32 %v499_v21, %v494_v19 }
 0xa26   :  { %v504_v28 = vpop.permute.xlu1 %503 }
 0xa27   :  { %v506_v20 = vmul.f32 %v504_v28, %v494_v19 }
 0xa29   :  { %508 = vrot.lane.b32.xlu0 %v506_v20, %s971_s7 }
 0xa9b   :  { %v509_v23 = vpop.permute.xlu0 %508 }
 0xa9c   :  { %v511_v24 = vadd.f32 %v509_v23, %v501_v22 }
 0xa9e   :  { %943 = vtanh.f32 %v511_v24  ;;  %528 = vrot.lane.b32.xlu0 %v511_v24, %s973_s10 }
 0xaa4   :  { %v944_v25 = vpop.eup %943 }
 0xaa5   :  { %514 = vrot.lane.b32.xlu1 %v944_v25, %s970_s30 }
 0xb10   :  { %v529_v30 = vpop.permute.xlu0 %528 }
 0xb11   :  { %v531_v33 = vmul.f32 %v529_v30, %v518_v26 }
 0xb13   :  { %v533_v39 = vadd.f32 %v532_v34, %v531_v33 }
 0xb15   :  { %v623_v12 = vmul.f32 %v615_v10, %v533_v39 }
 0xb17   :  { %v515_v27 = vpop.permute.xlu1 %514 }
 0xb18   :  { %v517_v29 = vmul.f32 %v515_v27, %v494_v19 }
 0xb1a   :  { %520 = vrot.lane.b32.xlu2 %v517_v29, %s971_s7 }
 0xb22   :  { %589 = vrot.lane.b32.xlu2 %v533_v39, %s971_s7 }
 0xb74   :  { %v521_v41 = vpop.permute.xlu2 %520 }
 0xb75   :  { %v1170_v43 = vmul.f32 %v521_v41, %v518_v26 }
 0xb77   :  { %v526_v17 = vadd.f32 %v525_v42, %v1170_v43  ;;  %860 = vst.msk [vmem:[%s1296_s3 + $0x20] sm:$0xff] %vm122_vm7, %v1170_v43 }
 0xb79   :  { %863 = vmatmul.msk.f32.vlgmr.msrb.gmra.mxu1 %vm27_vm8, %v526_v17  ;;  %v616_v16 = vmul.f32 %v615_v10, %v526_v17 }
 0xb7c   :  { %v590_v0 = vpop.permute.xlu2 %589 }
 0xbf6   :  { %v564_v18 = vpop.f32.mrf.mxu1 }
 0xbf7   :  { %v567_v44 = vadd.f32 %v862_v4, %v564_v18 }
 0xbf9   :  { %945 = vtanh.f32 %v567_v44  ;;  %v864_v47 = vmul.f32 -1.442695, %v567_v44 }
 0xbfb   :  { %947 = vpow2.f32 %v864_v47 }
 0xbff   :  { %v946_v46 = vpop.eup %945 }
 0xc00   :  { %594 = vrot.lane.b32.xlu1 %v946_v46, %s970_s30 }
 0xc01   :  { %v948_v48 = vpop.eup %947 }
 0xc02   :  { %v571_v49 = vadd.f32 1.0, %v948_v48 }
 0xc04   :  { %949 = vrcp.f32 %v571_v49  ;;  %v583_v55 = vand.u32 2147483648, %v571_v49  ;;  %vm577_vm3 = vweird.f32 %v571_v49  ;;  %v581_v56 = vand.u32 2147483647, %v571_v49 }
 0xc06   :  { %v584_v58 = vor.u32 1.1754944e-38, %v583_v55  ;;  %vm582_vm5 = vcmp.eq.f32.partialorder %v581_v56, 8.507059e+37 }
 0xc0a   :  { %v950_v50 = vpop.eup %949 }
 0xc0b   :  { %v573_v51 = vmul.f32 %v950_v50, %v571_v49  ;;  %vm578_vm2 = vweird.f32 %v950_v50  ;;  %v706_v49 = vsub.f32 1.0, %v1071_v60 }
 0xc0c   :  { %vm579_vm4 = vmor %vm577_vm3, %vm578_vm2 }
 0xc0d   :  { %v574_v52 = vsub.f32 1.0, %v573_v51 }
 0xc0f   :  { %v575_v53 = vmul.f32 %v950_v50, %v574_v52 }
 0xc11   :  { %v576_v54 = vadd.f32 %v950_v50, %v575_v53 }
 0xc13   :  { %v580_v57 = vsel %vm579_vm4, %v950_v50, %v576_v54 }
 0xc14   :  { %v585_v62 = vsel %vm582_vm5, %v584_v58, %v580_v57  ;;  %v872_v57 = vld [vmem:[%s1294_s1 + $0x38] sm:$0xff]  ;;  %s974_s1 = smov 112  }
 0xc15   :  { %v592_v1 = vmul.f32 %v590_v0, %v585_v62 }
 0xc72   :  { %v595_v59 = vpop.permute.xlu1 %594 }
 0xc73   :  { %v597_v63 = vmul.f32 %v595_v59, %v585_v62 }
 0xc75   :  { %599 = vrot.lane.b32.xlu0 %v597_v63, %s971_s7 }
 0xce7   :  { %v600_v2 = vpop.permute.xlu0 %599 }
 0xce8   :  { %v602_v3 = vadd.f32 %v600_v2, %v592_v1 }
 0xcea   :  { %951 = vtanh.f32 %v602_v3  ;;  %619 = vrot.lane.b32.xlu0 %v602_v3, %s973_s10 }
 0xcf0   :  { %v952_v5 = vpop.eup %951 }
 0xcf1   :  { %605 = vrot.lane.b32.xlu1 %v952_v5, %s970_s30 }
 0xd5c   :  { %v620_v9 = vpop.permute.xlu0 %619 }
 0xd5d   :  { %v622_v11 = vmul.f32 %v620_v9, %v609_v8 }
 0xd5f   :  { %v624_v13 = vadd.f32 %v623_v12, %v622_v11 }
 0xd61   :  { %v714_v51 = vmul.f32 %v706_v49, %v624_v13 }
 0xd63   :  { %v606_v6 = vpop.permute.xlu1 %605 }
 0xd64   :  { %v608_v7 = vmul.f32 %v606_v6, %v585_v62 }
 0xd66   :  { %611 = vrot.lane.b32.xlu2 %v608_v7, %s971_s7 }
 0xd6e   :  { %680 = vrot.lane.b32.xlu2 %v624_v13, %s971_s7 }
 0xdc0   :  { %v612_v14 = vpop.permute.xlu2 %611 }
 0xdc1   :  { %v1194_v28 = vmul.f32 %v612_v14, %v609_v8 }
 0xdc3   :  { %v617_v19 = vadd.f32 %v616_v16, %v1194_v28  ;;  %865 = vst.msk [vmem:[%s1296_s3 + $0x28] sm:$0xff] %vm122_vm7, %v1194_v28 }
 0xdc5   :  { %868 = vmatmul.msk.f32.vlgmr.msrb.gmra.mxu2 %vm27_vm8, %v617_v19  ;;  %v707_v54 = vmul.f32 %v706_v49, %v617_v19 }
 0xdc8   :  { %v681_v42 = vpop.permute.xlu2 %680 }
 0xe48   :  { %v655_v35 = vpop.f32.mrf.mxu2 }
 0xe49   :  { %v658_v36 = vadd.f32 %v867_v37, %v655_v35 }
 0xe4b   :  { %953 = vtanh.f32 %v658_v36  ;;  %v869_v20 = vmul.f32 -1.442695, %v658_v36  ;;  %v797_v36 = vsub.f32 1.0, %v1045_v40 }
 0xe4d   :  { %955 = vpow2.f32 %v869_v20 }
 0xe51   :  { %v954_v38 = vpop.eup %953 }
 0xe52   :  { %685 = vrot.lane.b32.xlu1 %v954_v38, %s970_s30 }
 0xe53   :  { %v956_v21 = vpop.eup %955 }
 0xe54   :  { %v662_v22 = vadd.f32 1.0, %v956_v21 }
 0xe56   :  { %957 = vrcp.f32 %v662_v22  ;;  %v674_v29 = vand.u32 2147483648, %v662_v22  ;;  %vm668_vm9 = vweird.f32 %v662_v22  ;;  %v672_v30 = vand.u32 2147483647, %v662_v22 }
 0xe58   :  { %v675_v33 = vor.u32 1.1754944e-38, %v674_v29  ;;  %vm673_vm11 = vcmp.eq.f32.partialorder %v672_v30, 8.507059e+37 }
 0xe5c   :  { %v958_v23 = vpop.eup %957 }
 0xe5d   :  { %v664_v24 = vmul.f32 %v958_v23, %v662_v22  ;;  %vm669_vm6 = vweird.f32 %v958_v23 }
 0xe5e   :  { %vm670_vm10 = vmor %vm668_vm9, %vm669_vm6 }
 0xe5f   :  { %v665_v25 = vsub.f32 1.0, %v664_v24 }
 0xe61   :  { %v666_v26 = vmul.f32 %v958_v23, %v665_v25 }
 0xe63   :  { %v667_v27 = vadd.f32 %v958_v23, %v666_v26 }
 0xe65   :  { %v671_v32 = vsel %vm670_vm10, %v958_v23, %v667_v27 }
 0xe66   :  { %v676_v39 = vsel %vm673_vm11, %v675_v33, %v671_v32 }
 0xe67   :  { %v683_v17 = vmul.f32 %v681_v42, %v676_v39 }
 0xec4   :  { %v686_v34 = vpop.permute.xlu1 %685 }
 0xec5   :  { %v688_v41 = vmul.f32 %v686_v34, %v676_v39 }
 0xec7   :  { %690 = vrot.lane.b32.xlu0 %v688_v41, %s971_s7 }
 0xf39   :  { %v691_v4 = vpop.permute.xlu0 %690 }
 0xf3a   :  { %v693_v18 = vadd.f32 %v691_v4, %v683_v17 }
 0xf3c   :  { %959 = vtanh.f32 %v693_v18  ;;  %710 = vrot.lane.b32.xlu0 %v693_v18, %s973_s10 }
 0xf42   :  { %v960_v44 = vpop.eup %959 }
 0xf43   :  { %696 = vrot.lane.b32.xlu1 %v960_v44, %s970_s30 }
 0xfae   :  { %v711_v48 = vpop.permute.xlu0 %710 }
 0xfaf   :  { %v713_v50 = vmul.f32 %v711_v48, %v1071_v60 }
 0xfb1   :  { %v715_v52 = vadd.f32 %v714_v51, %v713_v50 }
 0xfb3   :  { %v805_v21 = vmul.f32 %v797_v36, %v715_v52 }
 0xfb5   :  { %v697_v46 = vpop.permute.xlu1 %696 }
 0xfb6   :  { %v699_v47 = vmul.f32 %v697_v46, %v676_v39 }
 0xfb8   :  { %702 = vrot.lane.b32.xlu2 %v699_v47, %s971_s7 }
 0xfc0   :  { %771 = vrot.lane.b32.xlu2 %v715_v52, %s971_s7 }
0x1012   :  { %v703_v53 = vpop.permute.xlu2 %702 }
0x1013   :  { %v705_v55 = vmul.f32 %v703_v53, %v1071_v60 }
0x1015   :  { %v1215_v56 = vadd.f32 %v707_v54, %v705_v55  ;;  %870 = vst.msk [vmem:[%s1296_s3 + $0x30] sm:$0xff] %vm122_vm7, %v705_v55 }
0x1017   :  { %873 = vmatmul.msk.f32.vlgmr.msrb.gmra.mxu3 %vm27_vm8, %v1215_v56  ;;  %v798_v27 = vmul.f32 %v797_v36, %v1215_v56 }
0x101a   :  { %v772_v14 = vpop.permute.xlu2 %771 }
0x109a   :  { %v746_v58 = vpop.f32.mrf.mxu3 }
0x109b   :  { %v749_v59 = vadd.f32 %v872_v57, %v746_v58 }
0x109d   :  { %961 = vtanh.f32 %v749_v59  ;;  %v874_v60 = vmul.f32 -1.442695, %v749_v59 }
0x109f   :  { %963 = vpow2.f32 %v874_v60 }
0x10a3   :  { %v962_v62 = vpop.eup %961 }
0x10a4   :  { %776 = vrot.lane.b32.xlu1 %v962_v62, %s970_s30 }
0x10a5   :  { %v964_v63 = vpop.eup %963 }
0x10a6   :  { %v753_v0 = vadd.f32 1.0, %v964_v63 }
0x10a8   :  { %965 = vrcp.f32 %v753_v0  ;;  %v765_v7 = vand.u32 2147483648, %v753_v0  ;;  %vm759_vm13 = vweird.f32 %v753_v0  ;;  %v763_v8 = vand.u32 2147483647, %v753_v0 }
0x10aa   :  { %v766_v10 = vor.u32 1.1754944e-38, %v765_v7  ;;  %vm764_vm15 = vcmp.eq.f32.partialorder %v763_v8, 8.507059e+37 }
0x10ae   :  { %v966_v1 = vpop.eup %965 }
0x10af   :  { %v755_v2 = vmul.f32 %v966_v1, %v753_v0  ;;  %vm760_vm12 = vweird.f32 %v966_v1 }
0x10b0   :  { %vm761_vm14 = vmor %vm759_vm13, %vm760_vm12 }
0x10b1   :  { %v756_v3 = vsub.f32 1.0, %v755_v2 }
0x10b3   :  { %v757_v5 = vmul.f32 %v966_v1, %v756_v3 }
0x10b5   :  { %v758_v6 = vadd.f32 %v966_v1, %v757_v5 }
0x10b7   :  { %v762_v9 = vsel %vm761_vm14, %v966_v1, %v758_v6 }
0x10b8   :  { %v767_v12 = vsel %vm764_vm15, %v766_v10, %v762_v9 }
0x10b9   :  { %v774_v16 = vmul.f32 %v772_v14, %v767_v12 }
0x1116   :  { %v777_v11 = vpop.permute.xlu1 %776 }
0x1117   :  { %v779_v13 = vmul.f32 %v777_v11, %v767_v12 }
0x1119   :  { %781 = vrot.lane.b32.xlu0 %v779_v13, %s971_s7 }
0x118b   :  { %v782_v19 = vpop.permute.xlu0 %781 }
0x118c   :  { %v784_v37 = vadd.f32 %v782_v19, %v774_v16 }
0x118e   :  { %967 = vtanh.f32 %v784_v37  ;;  %801 = vrot.lane.b32.xlu0 %v784_v37, %s973_s10 }
0x1194   :  { %v968_v35 = vpop.eup %967 }
0x1195   :  { %787 = vrot.lane.b32.xlu1 %v968_v35, %s970_s30 }
0x1196   :  { %339 = vrot.lane.b32.xlu0 %v1118_v15, %s974_s1 }
0x119d   :  { %125 = vrot.lane.b32.xlu1 %v1049_v45, %s974_s1 }
0x119e   :  { %628 = vrot.lane.b32.xlu0 %v1194_v28, %s974_s1 }
0x11a5   :  { %446 = vrot.lane.b32.xlu1 %v1146_v61, %s974_s1 }
0x11ad   :  { %719 = vrot.lane.b32.xlu1 %v705_v55, %s974_s1 }
0x1200   :  { %v802_v38 = vpop.permute.xlu0 %801 }
0x1201   :  { %v804_v20 = vmul.f32 %v802_v38, %v1045_v40 }
0x1203   :  { %v806_v22 = vadd.f32 %v805_v21, %v804_v20 }
0x1205   :  { %815 = vst.msk [vmem:[%s1297_s6] sm:$0xff] %vm27_vm8, %v806_v22 }
0x1207   :  { %v788_v45 = vpop.permute.xlu1 %787 }
0x1208   :  { %v790_v15 = vmul.f32 %v788_v45, %v767_v12  ;;  %v340_v28 = vpop.permute.xlu0 %339 }
0x1209   :  { %849 = vst.msk [vmem:[%s1298_s4 + $0x28] sm:$0xff] %vm122_vm7, %v340_v28 }
0x120a   :  { %793 = vrot.lane.b32.xlu2 %v790_v15, %s971_s7 }
0x120f   :  { %v126_v61 = vpop.permute.xlu1 %125 }
0x1210   :  { %835 = vst.msk [vmem:[%s1298_s4 + $0x38] sm:$0xff] %vm122_vm7, %v126_v61  ;;  %v629_v23 = vpop.permute.xlu0 %628 }
0x1211   :  { %866 = vst.msk [vmem:[%s1298_s4 + $0x10] sm:$0xff] %vm122_vm7, %v629_v23 }
0x1212   :  { %232 = vrot.lane.b32.xlu2 %v1085_v31, %s974_s1 }
0x1217   :  { %v447_v24 = vpop.permute.xlu1 %446 }
0x1218   :  { %856 = vst.msk [vmem:[%s1298_s4 + $0x20] sm:$0xff] %vm122_vm7, %v447_v24 }
0x121a   :  { %537 = vrot.lane.b32.xlu2 %v1170_v43, %s974_s1 }
0x121f   :  { %v720_v25 = vpop.permute.xlu1 %719 }
0x1220   :  { %871 = vst.msk [vmem:[%s1298_s4 + $0x8] sm:$0xff] %vm122_vm7, %v720_v25 }
0x1264   :  { %v794_v26 = vpop.permute.xlu2 %793 }
0x1265   :  { %v796_v31 = vmul.f32 %v794_v26, %v1045_v40 }
0x1267   :  { %v799_v29 = vadd.f32 %v798_v27, %v796_v31  ;;  %875 = vst.msk [vmem:[%s1296_s3 + $0x38] sm:$0xff] %vm122_vm7, %v796_v31  ;;  %810 = vrot.lane.b32.xlu2 %v796_v31, %s974_s1 }
0x1269   :  { %814 = vst.msk [vmem:[%s1299_s5] sm:$0xff] %vm27_vm8, %v799_v29 }
0x126c   :  { %v233_v43 = vpop.permute.xlu2 %232 }
0x126d   :  { %842 = vst.msk [vmem:[%s1298_s4 + $0x30] sm:$0xff] %vm122_vm7, %v233_v43 }
0x1274   :  { %v538_v40 = vpop.permute.xlu2 %537 }
0x1275   :  { %861 = vst.msk [vmem:[%s1298_s4 + $0x18] sm:$0xff] %vm122_vm7, %v538_v40 }
0x12c1   :  { %v811_v30 = vpop.permute.xlu2 %810 }
0x12c2   :  { %813 = vst.msk [vmem:[%s1298_s4] sm:$0xff] %vm122_vm7, %v811_v30 }

</bundles_post_ra>
